<compile_context>
chip_gen: v7x
topology: tpu7x:2x2x1
jax: 0.10.0
libtpu: 0.0.40
codegen_flags: <defaults>
</compile_context>

<pallas_src>
import functools
import math

import jax
import jax.numpy as jnp
from jax import lax
from jax.experimental import pallas as pl
from jax.experimental.pallas import tpu as pltpu


# murmur3 fmix32 constants as signed int32 (two's complement of the usual hex).
_FMIX_C1 = -2048144789    # 0x85EBCA6B
_FMIX_C2 = -1028477387    # 0xC2B2AE35
_GOLDEN = -1640531527     # 0x9E3779B9


def _shr_logical(x, k):
    """Logical right shift for int32 (arithmetic shift + mask of the low bits)."""
    return jnp.bitwise_and(jnp.right_shift(x, k), (1 << (32 - k)) - 1)


def _fmix32(h):
    """murmur3 finalizer: good avalanche, pure int32 VPU ops (mul/xor/shift)."""
    h = jnp.bitwise_xor(h, _shr_logical(h, 16))
    h = h * _FMIX_C1
    h = jnp.bitwise_xor(h, _shr_logical(h, 13))
    h = h * _FMIX_C2
    h = jnp.bitwise_xor(h, _shr_logical(h, 16))
    return h


def _gumbel_quantize_kernel(seed_ref, x_ref, w_ref, b_ref, *refs,
                            n_embed, tile_m, n_valid, temperature, hard,
                            emit_noise):
    refs = list(refs)
    e_ref = None if hard else refs.pop(0)      # codebook only needed on soft path
    ind_ref = refs.pop(0)
    kld_ref = refs.pop(0)
    zq_ref = None if hard else refs.pop(0)
    noise_ref = refs.pop(0) if emit_noise else None

    i = pl.program_id(0)
    seed = seed_ref[0]

    # ---- in-kernel Gumbel(0,1) noise from a stateless integer hash ----------
    # (no (N, n_embed) noise stream read from HBM; lowers on Mosaic and in
    #  interpret mode because it is only int32 mul/xor/shift + convert)
    row = lax.broadcasted_iota(jnp.int32, (tile_m, n_embed), 0)
    col = lax.broadcasted_iota(jnp.int32, (tile_m, n_embed), 1)
    gid = (i * tile_m + row) * n_embed + col           # global element id (wraps ok)
    h = _fmix32(gid + seed * _GOLDEN)
    u24 = jnp.bitwise_and(jnp.right_shift(h, 8), 0x00FFFFFF)   # top 24 bits
    u = u24.astype(jnp.float32) * (1.0 / 16777216.0)            # uniform [0,1)
    g = -jnp.log(-jnp.log(u + 1e-20) + 1e-20)                   # Gumbel(0,1)
    if noise_ref is not None:                                    # debug only
        noise_ref[...] = g

    # ---- 1x1 conv == per-pixel matmul over channels (MXU) --------------------
    x = x_ref[...].astype(jnp.float32)                                  # (tm, C)
    logits = jnp.dot(x, w_ref[...],
                     preferred_element_type=jnp.float32) + b_ref[...]   # (tm, nE)

    # ---- gumbel-softmax index (codebook axis = lanes) ------------------------
    if hard:
        # temperature > 0 does not change the argmax; skip the y-softmax entirely
        y = logits + g
    else:
        y = (logits + g) * (1.0 / temperature)
    y_max = jnp.max(y, axis=-1, keepdims=True)
    # first-index argmax via iota (portable; jnp.argmax lowering not relied upon)
    idx = jnp.min(jnp.where(y == y_max, col, n_embed), axis=-1, keepdims=True)
    ind_ref[...] = idx.astype(jnp.int32)

    if not hard:
        p = jnp.exp(y - y_max)
        soft = p / jnp.sum(p, axis=-1, keepdims=True)
        zq_ref[...] = jnp.dot(soft, e_ref[...],
                              preferred_element_type=jnp.float32).astype(zq_ref.dtype)

    # ---- KL(qy || uniform): sum(l_exp*l_shift)/s - log s + log n -------------
    l_max = jnp.max(logits, axis=-1, keepdims=True)
    l_shift = logits - l_max
    l_exp = jnp.exp(l_shift)
    s = jnp.sum(l_exp, axis=-1, keepdims=True)                          # (tm, 1)
    kl_row = (jnp.sum(l_exp * l_shift, axis=-1, keepdims=True) / s
              + (math.log(float(n_embed)) - jnp.log(s)))                # (tm, 1)

    # mask padded rows (rows >= n_valid contribute 0)
    row_id = i * tile_m + lax.broadcasted_iota(jnp.int32, (tile_m, 1), 0)
    kl_row = jnp.where(row_id < n_valid, kl_row, 0.0)
    tile_sum = jnp.sum(kl_row, axis=0, keepdims=True)                   # (1, 1)

    # lane-dense (8,128) partial-sum tile per grid step: value at [0,0], zeros else
    r8 = lax.broadcasted_iota(jnp.int32, (8, 128), 0)
    c128 = lax.broadcasted_iota(jnp.int32, (8, 128), 1)
    kld_ref[...] = jnp.where((r8 == 0) & (c128 == 0), tile_sum, 0.0)


# live f32 temporaries scale with tile_m * n_embed; keep them under this budget
# so the pipeline also fits v7x's 64 MiB per-core VMEM with headroom.
_VMEM_TEMP_BUDGET = 32 * 1024 * 1024


def _choose_tile_m(requested, n_rows, n_embed, C, d, hard, emit_noise):
    bytes_per_row = 4 * (8 * n_embed + 2 * C + 8)
    if not hard:
        bytes_per_row += 4 * (n_embed + 2 * d)
    if emit_noise:
        bytes_per_row += 4 * 2 * n_embed
    cap = max(8, _VMEM_TEMP_BUDGET // max(bytes_per_row, 1))
    tm = max(8, min(int(requested), int(n_rows), int(cap)))
    if tm >= 128:
        tm = (tm // 128) * 128      # MXU / lane granularity
    else:
        tm = max(8, (tm // 8) * 8)  # sublane granularity
    return tm


def _vmem_limit_bytes(tile_m, C, n_embed, d, hard, emit_noise):
    f = 8 * tile_m * n_embed * 4              # live f32 temporaries
    f += 2 * tile_m * C * 4                   # x double-buffer
    f += 2 * (C + 1) * n_embed * 4            # proj W + bias buffers
    f += 2 * tile_m * 4 + 2 * 8 * 128 * 4     # ind + kld partial outputs
    if not hard:
        f += 2 * n_embed * d * 4 + 2 * tile_m * d * 4
    if emit_noise:
        f += 2 * tile_m * n_embed * 4
    limit = max(f + (f >> 2) + (2 << 20), 16 << 20)
    return int(min(limit, 112 << 20))         # never request > ~7/8 of v5e/v6e VMEM


def gumbel_quantize_forward(z, proj_w, proj_b, embed_w, seed, *,
                            temperature=1.0, kld_scale=5e-4, hard=True,
                            tile_m=512, return_noise=False, channels_last=False):
    """Forward of GumbelQuantize.

    z: (B, num_hiddens, H, W) NCHW (PyTorch convention) unless channels_last.
    Returns (z_q, diff, ind) [+ gumbel noise if return_noise].
    """
    assert temperature > 0.0, "temperature must be > 0"
    if channels_last:
        B, H, W, C = z.shape
    else:
        B, C, H, W = z.shape
    n_embed, embedding_dim = embed_w.shape
    N = B * H * W

    tm = _choose_tile_m(tile_m, N, n_embed, C, embedding_dim, hard, return_noise)
    num_tiles = pl.cdiv(N, tm)
    N_pad = num_tiles * tm

    # rows = pixels, channels on the lane axis
    if channels_last:
        x = z.reshape(N, C).astype(jnp.float32)
    else:
        x = jnp.transpose(z, (0, 2, 3, 1)).reshape(N, C).astype(jnp.float32)
    if N_pad != N:
        x = jnp.pad(x, ((0, N_pad - N), (0, 0)))

    w = jnp.transpose(proj_w.reshape(n_embed, C), (1, 0)).astype(jnp.float32)
    b = proj_b.reshape(1, n_embed).astype(jnp.float32)
    seed_arr = jnp.asarray([seed], dtype=jnp.int32)

    kernel = functools.partial(
        _gumbel_quantize_kernel,
        n_embed=n_embed, tile_m=tm, n_valid=N,
        temperature=float(temperature), hard=hard, emit_noise=return_noise)

    in_specs = [
        pl.BlockSpec((tm, C), lambda i, s: (i, 0)),            # x rows
        pl.BlockSpec((C, n_embed), lambda i, s: (0, 0)),       # proj W (const)
        pl.BlockSpec((1, n_embed), lambda i, s: (0, 0)),       # proj bias (const)
    ]
    inputs = [x, w, b]
    if not hard:
        in_specs.append(pl.BlockSpec((n_embed, embedding_dim), lambda i, s: (0, 0)))
        inputs.append(embed_w.astype(jnp.float32))

    out_shape = [
        jax.ShapeDtypeStruct((N_pad, 1), jnp.int32),               # indices
        jax.ShapeDtypeStruct((num_tiles * 8, 128), jnp.float32),   # KL partials
    ]
    out_specs = [
        pl.BlockSpec((tm, 1), lambda i, s: (i, 0)),
        pl.BlockSpec((8, 128), lambda i, s: (i, 0)),
    ]
    if not hard:
        out_shape.append(jax.ShapeDtypeStruct((N_pad, embedding_dim), jnp.float32))
        out_specs.append(pl.BlockSpec((tm, embedding_dim), lambda i, s: (i, 0)))
    if return_noise:
        out_shape.append(jax.ShapeDtypeStruct((N_pad, n_embed), jnp.float32))
        out_specs.append(pl.BlockSpec((tm, n_embed), lambda i, s: (i, 0)))

    outs = pl.pallas_call(
        kernel,
        out_shape=tuple(out_shape),
        grid_spec=pltpu.PrefetchScalarGridSpec(
            num_scalar_prefetch=1,                                  # seed -> SMEM
            grid=(num_tiles,),
            in_specs=in_specs,
            out_specs=tuple(out_specs),
        ),
        compiler_params=pltpu.CompilerParams(
            # every grid step writes its own disjoint output tiles -> safe to
            # split the grid axis across TensorCores
            dimension_semantics=("parallel",),
            vmem_limit_bytes=_vmem_limit_bytes(
                tm, C, n_embed, embedding_dim, hard, return_noise),
        ),
    )(seed_arr, *inputs)

    ind_flat = outs[0][:N, 0]
    kld_parts = outs[1]
    nxt = 2
    if not hard:
        zq_flat = outs[nxt][:N]
        nxt += 1
    else:
        # hard path: z_q is a pure embedding gather -> no dense one-hot matmul
        zq_flat = jnp.take(embed_w, ind_flat, axis=0)

    diff = kld_scale * jnp.sum(kld_parts) / float(N)
    ind = ind_flat.reshape(B, H, W)
    if channels_last:
        z_q = zq_flat.reshape(B, H, W, embedding_dim)
    else:
        z_q = jnp.transpose(zq_flat.reshape(B, H, W, embedding_dim), (0, 3, 1, 2))

    if return_noise:
        return z_q, diff, ind, outs[nxt][:N]
    return z_q, diff, ind


def _reference_forward(z, proj_w, proj_b, embed_w, gumbel,
                       *, temperature=1.0, kld_scale=5e-4, hard=True):
    """Pure-JAX reference mirroring the PyTorch forward."""
    B, C, H, W = z.shape
    n_embed, d = embed_w.shape
    x = jnp.transpose(z, (0, 2, 3, 1)).reshape(-1, C)
    logits = x @ proj_w.reshape(n_embed, C).T + proj_b
    y = (logits + gumbel) / temperature
    y_soft = jax.nn.softmax(y, axis=-1)
    idx = jnp.argmax(y_soft, axis=-1)
    one_hot = jax.nn.one_hot(idx, n_embed, dtype=jnp.float32)
    soft = one_hot if hard else y_soft
    z_q = (soft @ embed_w).reshape(B, H, W, d).transpose(0, 3, 1, 2)
    qy = jax.nn.softmax(logits, axis=-1)
    diff = kld_scale * jnp.mean(jnp.sum(qy * jnp.log(qy * n_embed + 1e-10), axis=-1))
    return z_q, diff, idx.reshape(B, H, W)


if __name__ == "__main__":
    # small sizes that still exercise multi-tile + row padding (N = 288, 3 tiles)
    B, num_hiddens, H, W = 2, 16, 12, 12
    n_embed, embedding_dim = 32, 16

    key = jax.random.PRNGKey(0)
    k_z, k_w, k_b, k_e = jax.random.split(key, 4)

    z = jax.random.normal(k_z, (B, num_hiddens, H, W), dtype=jnp.float32)
    proj_w = 0.1 * jax.random.normal(k_w, (n_embed, num_hiddens, 1, 1), dtype=jnp.float32)
    proj_b = 0.1 * jax.random.normal(k_b, (n_embed,), dtype=jnp.float32)
    embed_w = jax.random.normal(k_e, (n_embed, embedding_dim), dtype=jnp.float32)

    seed = 1234

    # production hard path: no noise / one-hot / codebook matmul in the kernel
    z_q, diff, ind = gumbel_quantize_forward(
        z, proj_w, proj_b, embed_w, seed, tile_m=128)
    jax.block_until_ready((z_q, diff, ind))

    # debug path: also emit the in-kernel gumbel noise for verification
    z_q_d, diff_d, ind_d, noise = gumbel_quantize_forward(
        z, proj_w, proj_b, embed_w, seed, tile_m=128, return_noise=True)
    jax.block_until_ready((z_q_d, diff_d, ind_d, noise))

    # full forward check against pure-JAX reference using the kernel's own noise
    z_q_ref, diff_ref, ind_ref = _reference_forward(z, proj_w, proj_b, embed_w, noise)
    assert jnp.allclose(z_q_d, z_q_ref, atol=1e-4, rtol=1e-4)
    assert jnp.allclose(diff_d, diff_ref, atol=1e-5)
    assert jnp.array_equal(ind_d, ind_ref)

    # production path matches debug path (same seed -> same hash noise)
    assert jnp.array_equal(ind, ind_d)
    assert jnp.allclose(z_q, z_q_d, atol=1e-6, rtol=1e-6)
    assert jnp.allclose(diff, diff_d, atol=1e-7)

    # hard-quantization invariant: every z_q pixel is exactly a codebook row
    zq_rows = jnp.transpose(z_q, (0, 2, 3, 1)).reshape(-1, embedding_dim)
    assert jnp.allclose(zq_rows, embed_w[ind.reshape(-1)], atol=1e-6)
    # KL term is independent of the gumbel noise -> must also match the reference
    assert jnp.allclose(diff, diff_ref, atol=1e-5)

    # soft path (hard=False): in-kernel softmax weights + codebook matmul
    z_q_s, diff_s, ind_s, noise_s = gumbel_quantize_forward(
        z, proj_w, proj_b, embed_w, seed, tile_m=128, hard=False, return_noise=True)
    jax.block_until_ready((z_q_s, diff_s, ind_s))
    z_q_sr, diff_sr, ind_sr = _reference_forward(
        z, proj_w, proj_b, embed_w, noise_s, hard=False)
    assert jnp.allclose(z_q_s, z_q_sr, atol=1e-4, rtol=1e-4)
    assert jnp.allclose(diff_s, diff_sr, atol=1e-5)
    assert jnp.array_equal(ind_s, ind_sr)

    print("KERNEL_OK")
</pallas_src>

<mosaic_0001>
module attributes {stable_mosaic.version = 11 : i64} {
  func.func @_gumbel_quantize_kernel(%arg0: i32, %arg1: memref<1xi32, #tpu.memory_space<smem>>, %arg2: memref<128x16xf32, #tpu.memory_space<vmem>>, %arg3: memref<16x32xf32, #tpu.memory_space<vmem>>, %arg4: memref<1x32xf32, #tpu.memory_space<vmem>>, %arg5: memref<128x1xi32, #tpu.memory_space<vmem>>, %arg6: memref<8x128xf32, #tpu.memory_space<vmem>>) attributes {dimension_semantics = [#tpu.dimension_semantics<parallel>], iteration_bounds = array<i64: 3>, scalar_prefetch = 1 : i64, scratch_operands = 0 : i64, tpu.core_type = #tpu.core_type<tc>, window_params = [{transform_indices = @transform_0, window_bounds = array<i64: 128, 16>}, {pipeline_mode = #tpu.pipeline_mode<synchronous>, transform_indices = @transform_1, window_bounds = array<i64: 16, 32>}, {pipeline_mode = #tpu.pipeline_mode<synchronous>, transform_indices = @transform_2, window_bounds = array<i64: 1, 32>}, {transform_indices = @transform_3, window_bounds = array<i64: 128, 1>}, {transform_indices = @transform_4, window_bounds = array<i64: 8, 128>}]} {
    %c0 = arith.constant 0 : index
    %0 = memref.load %arg1[%c0] : memref<1xi32, #tpu.memory_space<smem>>
    %1 = tpu.iota {dimensions = array<i32: 0>} : vector<128x32xi32>
    %2 = tpu.iota {dimensions = array<i32: 1>} : vector<128x32xi32>
    %c128_i32 = arith.constant 128 : i32
    %3 = arith.muli %arg0, %c128_i32 : i32
    %4 = vector.broadcast %3 : i32 to vector<128x32xi32>
    %5 = arith.addi %4, %1 : vector<128x32xi32>
    %c32_i32 = arith.constant 32 : i32
    %6 = vector.broadcast %c32_i32 : i32 to vector<128x32xi32>
    %7 = arith.muli %5, %6 : vector<128x32xi32>
    %8 = arith.addi %7, %2 : vector<128x32xi32>
    %c-1640531527_i32 = arith.constant -1640531527 : i32
    %9 = arith.muli %0, %c-1640531527_i32 : i32
    %10 = vector.broadcast %9 : i32 to vector<128x32xi32>
    %11 = arith.addi %8, %10 : vector<128x32xi32>
    %c16_i32 = arith.constant 16 : i32
    %12 = vector.broadcast %c16_i32 : i32 to vector<128x32xi32>
    %13 = arith.shrsi %11, %12 : vector<128x32xi32>
    %c65535_i32 = arith.constant 65535 : i32
    %14 = vector.broadcast %c65535_i32 : i32 to vector<128x32xi32>
    %15 = arith.andi %13, %14 : vector<128x32xi32>
    %16 = arith.xori %11, %15 : vector<128x32xi32>
    %c-2048144789_i32 = arith.constant -2048144789 : i32
    %17 = vector.broadcast %c-2048144789_i32 : i32 to vector<128x32xi32>
    %18 = arith.muli %16, %17 : vector<128x32xi32>
    %c13_i32 = arith.constant 13 : i32
    %19 = vector.broadcast %c13_i32 : i32 to vector<128x32xi32>
    %20 = arith.shrsi %18, %19 : vector<128x32xi32>
    %c524287_i32 = arith.constant 524287 : i32
    %21 = vector.broadcast %c524287_i32 : i32 to vector<128x32xi32>
    %22 = arith.andi %20, %21 : vector<128x32xi32>
    %23 = arith.xori %18, %22 : vector<128x32xi32>
    %c-1028477387_i32 = arith.constant -1028477387 : i32
    %24 = vector.broadcast %c-1028477387_i32 : i32 to vector<128x32xi32>
    %25 = arith.muli %23, %24 : vector<128x32xi32>
    %c16_i32_0 = arith.constant 16 : i32
    %26 = vector.broadcast %c16_i32_0 : i32 to vector<128x32xi32>
    %27 = arith.shrsi %25, %26 : vector<128x32xi32>
    %c65535_i32_1 = arith.constant 65535 : i32
    %28 = vector.broadcast %c65535_i32_1 : i32 to vector<128x32xi32>
    %29 = arith.andi %27, %28 : vector<128x32xi32>
    %30 = arith.xori %25, %29 : vector<128x32xi32>
    %c8_i32 = arith.constant 8 : i32
    %31 = vector.broadcast %c8_i32 : i32 to vector<128x32xi32>
    %32 = arith.shrsi %30, %31 : vector<128x32xi32>
    %c16777215_i32 = arith.constant 16777215 : i32
    %33 = vector.broadcast %c16777215_i32 : i32 to vector<128x32xi32>
    %34 = arith.andi %32, %33 : vector<128x32xi32>
    %35 = arith.sitofp %34 : vector<128x32xi32> to vector<128x32xf32>
    %cst = arith.constant 5.96046448E-8 : f32
    %36 = vector.broadcast %cst : f32 to vector<128x32xf32>
    %37 = arith.mulf %35, %36 : vector<128x32xf32>
    %cst_2 = arith.constant 9.99999968E-21 : f32
    %38 = vector.broadcast %cst_2 : f32 to vector<128x32xf32>
    %39 = arith.addf %37, %38 : vector<128x32xf32>
    %40 = math.log %39 : vector<128x32xf32>
    %cst_3 = arith.constant 0.000000e+00 : f32
    %41 = vector.broadcast %cst_3 : f32 to vector<128x32xf32>
    %42 = arith.subf %41, %40 : vector<128x32xf32>
    %cst_4 = arith.constant 9.99999968E-21 : f32
    %43 = vector.broadcast %cst_4 : f32 to vector<128x32xf32>
    %44 = arith.addf %42, %43 : vector<128x32xf32>
    %45 = math.log %44 : vector<128x32xf32>
    %cst_5 = arith.constant 0.000000e+00 : f32
    %46 = vector.broadcast %cst_5 : f32 to vector<128x32xf32>
    %47 = arith.subf %46, %45 : vector<128x32xf32>
    %c0_6 = arith.constant 0 : index
    %c0_7 = arith.constant 0 : index
    %48 = vector.load %arg2[%c0_6, %c0_7] : memref<128x16xf32, #tpu.memory_space<vmem>>, vector<128x16xf32>
    %c0_8 = arith.constant 0 : index
    %c0_9 = arith.constant 0 : index
    %49 = vector.load %arg3[%c0_8, %c0_9] : memref<16x32xf32, #tpu.memory_space<vmem>>, vector<16x32xf32>
    %cst_10 = arith.constant dense<0.000000e+00> : vector<128x32xf32>
    %50 = tpu.matmul %48, %49, %cst_10 {dimension_numbers = #tpu.dot_dimension_numbers<[1], [0], [0], [1], [0, 0, 1, 1], [], []>} : vector<128x16xf32>, vector<16x32xf32>, vector<128x32xf32> -> vector<128x32xf32>
    %c0_11 = arith.constant 0 : index
    %c0_12 = arith.constant 0 : index
    %51 = vector.load %arg4[%c0_11, %c0_12] : memref<1x32xf32, #tpu.memory_space<vmem>>, vector<1x32xf32>
    %52 = vector.broadcast %51 : vector<1x32xf32> to vector<128x32xf32>
    %53 = arith.addf %50, %52 : vector<128x32xf32>
    %54 = arith.addf %53, %47 : vector<128x32xf32>
    %cst_13 = arith.constant dense<0xFF800000> : vector<128xf32>
    %55 = vector.multi_reduction <maximumf>, %54, %cst_13 [1] : vector<128x32xf32> to vector<128xf32>
    %56 = vector.shape_cast %55 : vector<128xf32> to vector<128x1xf32>
    %57 = vector.broadcast %56 : vector<128x1xf32> to vector<128x32xf32>
    %58 = arith.cmpf oeq, %54, %57 : vector<128x32xf32>
    %c32_i32_14 = arith.constant 32 : i32
    %59 = vector.broadcast %c32_i32_14 : i32 to vector<128x32xi32>
    %60 = arith.select %58, %2, %59 : vector<128x32xi1>, vector<128x32xi32>
    %cst_15 = arith.constant dense<2147483647> : vector<128xi32>
    %61 = vector.multi_reduction <minsi>, %60, %cst_15 [1] : vector<128x32xi32> to vector<128xi32>
    %62 = vector.shape_cast %61 : vector<128xi32> to vector<128x1xi32>
    %c0_16 = arith.constant 0 : index
    %c0_17 = arith.constant 0 : index
    %63 = vector.load %arg5[%c0_16, %c0_17] : memref<128x1xi32, #tpu.memory_space<vmem>>, vector<128x1xi32>
    tpu.vector_store %arg5[%c0_16, %c0_17], %62 {strides = array<i32>} : memref<128x1xi32, #tpu.memory_space<vmem>>, vector<128x1xi32>,
    %cst_18 = arith.constant dense<0xFF800000> : vector<128xf32>
    %64 = vector.multi_reduction <maximumf>, %53, %cst_18 [1] : vector<128x32xf32> to vector<128xf32>
    %65 = vector.shape_cast %64 : vector<128xf32> to vector<128x1xf32>
    %66 = vector.broadcast %65 : vector<128x1xf32> to vector<128x32xf32>
    %67 = arith.subf %53, %66 : vector<128x32xf32>
    %68 = math.exp %67 : vector<128x32xf32>
    %cst_19 = arith.constant dense<0.000000e+00> : vector<128xf32>
    %69 = vector.multi_reduction <add>, %68, %cst_19 [1] : vector<128x32xf32> to vector<128xf32>
    %70 = vector.shape_cast %69 : vector<128xf32> to vector<128x1xf32>
    %71 = arith.mulf %68, %67 : vector<128x32xf32>
    %cst_20 = arith.constant dense<0.000000e+00> : vector<128xf32>
    %72 = vector.multi_reduction <add>, %71, %cst_20 [1] : vector<128x32xf32> to vector<128xf32>
    %73 = vector.shape_cast %72 : vector<128xf32> to vector<128x1xf32>
    %74 = arith.divf %73, %70 : vector<128x1xf32>
    %75 = math.log %70 : vector<128x1xf32>
    %cst_21 = arith.constant 3.46573591 : f32
    %76 = vector.broadcast %cst_21 : f32 to vector<128x1xf32>
    %77 = arith.subf %76, %75 : vector<128x1xf32>
    %78 = arith.addf %74, %77 : vector<128x1xf32>
    %c128_i32_22 = arith.constant 128 : i32
    %79 = arith.muli %arg0, %c128_i32_22 : i32
    %80 = tpu.iota {dimensions = array<i32: 0>} : vector<128x1xi32>
    %81 = vector.broadcast %79 : i32 to vector<128x1xi32>
    %82 = arith.addi %81, %80 : vector<128x1xi32>
    %c288_i32 = arith.constant 288 : i32
    %83 = vector.broadcast %c288_i32 : i32 to vector<128x1xi32>
    %84 = arith.cmpi slt, %82, %83 : vector<128x1xi32>
    %cst_23 = arith.constant 0.000000e+00 : f32
    %85 = vector.broadcast %cst_23 : f32 to vector<128x1xf32>
    %86 = arith.select %84, %78, %85 : vector<128x1xi1>, vector<128x1xf32>
    %cst_24 = arith.constant dense<0.000000e+00> : vector<1xf32>
    %87 = vector.multi_reduction <add>, %86, %cst_24 [0] : vector<128x1xf32> to vector<1xf32>
    %88 = vector.shape_cast %87 : vector<1xf32> to vector<1x1xf32>
    %89 = tpu.iota {dimensions = array<i32: 0>} : vector<8x128xi32>
    %90 = tpu.iota {dimensions = array<i32: 1>} : vector<8x128xi32>
    %c0_i32 = arith.constant 0 : i32
    %91 = vector.broadcast %c0_i32 : i32 to vector<8x128xi32>
    %92 = arith.cmpi eq, %89, %91 : vector<8x128xi32>
    %c0_i32_25 = arith.constant 0 : i32
    %93 = vector.broadcast %c0_i32_25 : i32 to vector<8x128xi32>
    %94 = arith.cmpi eq, %90, %93 : vector<8x128xi32>
    %95 = arith.andi %92, %94 : vector<8x128xi1>
    %cst_26 = arith.constant 0.000000e+00 : f32
    %96 = vector.shape_cast %88 : vector<1x1xf32> to vector<1x1xf32>
    %97 = vector.broadcast %96 : vector<1x1xf32> to vector<8x128xf32>
    %98 = vector.broadcast %cst_26 : f32 to vector<8x128xf32>
    %99 = arith.select %95, %97, %98 : vector<8x128xi1>, vector<8x128xf32>
    %c0_27 = arith.constant 0 : index
    %c0_28 = arith.constant 0 : index
    %100 = vector.load %arg6[%c0_27, %c0_28] : memref<8x128xf32, #tpu.memory_space<vmem>>, vector<8x128xf32>
    tpu.vector_store %arg6[%c0_27, %c0_28], %99 {strides = array<i32>} : memref<8x128xf32, #tpu.memory_space<vmem>>, vector<8x128xf32>,
    return
  }
  func.func @transform_0(%arg0: i32, %arg1: memref<1xi32, #tpu.memory_space<smem>>) -> (i32, i32) {
    %c0_i32 = arith.constant 0 : i32
    %c0_i32_0 = arith.constant 0 : i32
    return %arg0, %c0_i32 : i32, i32
  }
  func.func @transform_1(%arg0: i32, %arg1: memref<1xi32, #tpu.memory_space<smem>>) -> (i32, i32) {
    %c0_i32 = arith.constant 0 : i32
    %c0_i32_0 = arith.constant 0 : i32
    %c0_i32_1 = arith.constant 0 : i32
    return %c0_i32, %c0_i32_0 : i32, i32
  }
  func.func @transform_2(%arg0: i32, %arg1: memref<1xi32, #tpu.memory_space<smem>>) -> (i32, i32) {
    %c0_i32 = arith.constant 0 : i32
    %c0_i32_0 = arith.constant 0 : i32
    %c0_i32_1 = arith.constant 0 : i32
    return %c0_i32, %c0_i32_0 : i32, i32
  }
  func.func @transform_3(%arg0: i32, %arg1: memref<1xi32, #tpu.memory_space<smem>>) -> (i32, i32) {
    %c0_i32 = arith.constant 0 : i32
    %c0_i32_0 = arith.constant 0 : i32
    return %arg0, %c0_i32 : i32, i32
  }
  func.func @transform_4(%arg0: i32, %arg1: memref<1xi32, #tpu.memory_space<smem>>) -> (i32, i32) {
    %c0_i32 = arith.constant 0 : i32
    %c0_i32_0 = arith.constant 0 : i32
    return %arg0, %c0_i32 : i32, i32
  }
}

</mosaic_0001>

<bundles_post_ra>
// kernel: tpu_custom_call.1
= control target key start
LH: loop header
LB: loop body
LE: loop exit
PB: predicated region body
PF: predicated region fallthrough
CT: control target
= control target key end

     0   :  { %s3010_s0 = inlined_call_operand.<no memory space> [shape: s32[1], index: 0, kind: input, shape index: {}]   ;;  %s3011_s1 = inlined_call_operand.vmem [shape: f32[384,16], index: 1, kind: input, shape index: {}]   ;;  %s3012_s2 = inlined_call_operand.vmem [shape: f32[16,32], index: 2, kind: input, shape index: {}]   ;;  %s3013_s3 = inlined_call_operand.vmem [shape: f32[1,32], index: 3, kind: input, shape index: {}]   ;;  %s3014_s4 = inlined_call_operand.vmem [shape: s32[384,1], index: 4, kind: output, shape index: {0}]   ;;  %s3015_s5 = inlined_call_operand.hbm [shape: f32[24,128], index: 5, kind: output, shape index: {1}]  }
   0x1   :  { %11 = sst [smem:[#allocation3]] %s3010_s0 }
   0x2   :  { %12 = vsyncpa [#allocation5], 0 }
   0x3   :  { %14 = vsyncpa [#allocation5 + $0x1], 0  ;;  %s2156_s20 = smov 0   ;;  %s2158_s21 = smov 0  }
   0x4   :  { %s2160_s22 = smov 0   ;;  %s2162_s23 = smov 0  }
   0x5 LB: > { %s2177_s0 = sadd.s32 4294967295, %s2120_s23   ;;  %s1712_s24 = sadd.s32 4294967294, %s2120_s23   ;;  %s2120_s23 = sphi %s2162_s23, %s3077_s23   ;;  %s2116_s22 = sphi %s2160_s22, %s3076_s22   ;;  %s2112_s21 = sphi %s2158_s21, %s3075_s21   ;;  %s2108_s20 = sphi %s2156_s20, %s3074_s20  }
   0x6   : > { %s2181_s25 = sadd.s32 1, %s2120_s23   ;;  %s121_s26 = sadd.s32 1, %s2116_s22 }
   0x7   : > { %s118_s27 = ssub.s32 %s2120_s23, %s2181_s25  ;;  %p131_p0 = scmp.ne.s32.totalorder %s2116_s22, %s2112_s21 }
   0x8   : > { %p119_p1 = scmp.eq.s32.totalorder %s118_s27, 0  ;;  %p132_p2 = scmp.eq.s32.totalorder %s2177_s0, 2 }
   0x9   : > { %p137_p3 = scmp.ne.s32.totalorder %s2112_s21, %s2108_s20  ;;  %p138_p4 = scmp.eq.s32.totalorder %s1712_s24, 2 }
   0xa   : > { %s2192_s28 = scalar_select %p119_p1, %s2116_s22, %s121_s26  }
   0xb   : > { %p2194_p5 = por %p132_p2, %p131_p0  ;;  %p2198_p6 = por %p138_p4, %p137_p3 }
   0xc   : > { %p1715_p7 = scmp.ge.s32.totalorder %s2120_s23, 1  ;;  %p171_p8 = scmp.lt.s32.totalorder %s2120_s23, 4 }
   0xe   : > { %p172_p9 = pnand %p1715_p7, %p171_p8 }
  0x10   : > { %175 = sbr.rel (%p172_p9) target bundleno = 775 (0x307), region = 32 }
  0x17   : > { %v686_v0 = vld [vmem:[%s3012_s2] sm:$0xff]  ;;  %v687_v1 = vld [vmem:[%s3012_s2 + $0x8] sm:$0xff]  ;;  %s1717_s10 = sshll.u32 %s2177_s0, 4  ;;  %vm695_vm0 = vcmask 130048   ;;  %v215_v19 = vlaneseq  ;;  %s1721_s15 = sshll.u32 %s2177_s0, 7  ;;  %vm905_vm1 = vcmask 261120  }
  0x18   : > { %v1853_v2 = vpack.c.bf16 %v687_v1, %v686_v0  ;;  %p203_p10 = scmp.lt.s32.totalorder %s1717_s10, 47  ;;  %s214_s16 = sld [smem:[#allocation3]]  ;;  %v2241_v22 = vstv %s1721_s15 }
  0x19   : > { %v2235_v20 = vshrl.u32 %v215_v19, 7  ;;  %v2257_v30 = vand.u32 127, %v215_v19  ;;  %s199_s6 = sand.u32 1, %s2112_s21   ;;  %s2941_s12 = scalar_lea.hbm %s3015_s5, %s1721_s15 }
  0x1a   : > { %1854 = vmatprep.subr.bf16.mxu0 %v1853_v2  ;;  %1857 = vmatprep.subr.bf16.mxu1 %v1853_v2  ;;  %s3079_s10 = smov (!%p203_p10, %s1717_s10), 47  ;;  %s2921_s7 = sshll.u32 %s199_s6, 3 }
  0x1b   : > { %1856 = vmatpush3.bf16.msra.mxu0 %v1853_v2  ;;  %1858 = vmatpush3.bf16.msra.mxu1 %v1853_v2  ;;  %s1718_s11 = sshll.u32 %s3079_s10, 3  ;;  %3040 = vst [vmem:[#allocation7_spill] sm:$0xff] %v2235_v20  ;;  %v217_v21 = vadd.s32 8, %v2235_v20  ;;  %v225_v23 = vadd.s32 72, %v2235_v20  ;;  %v219_v26 = vadd.s32 24, %v2235_v20  ;;  %v2253_v27 = vadd.s32 %v2241_v22, %v2235_v20  ;;  %s201_s8 = scalar_lea.vmem [#allocation4], %s2921_s7 }
  0x1c   : > { %s206_s14 = scalar_lea.vmem %s3011_s1, %s1718_s11  ;;  %v227_v28 = vadd.s32 88, %v2235_v20  ;;  %v224_v29 = vadd.s32 64, %v2235_v20  ;;  %v218_v39 = vadd.s32 16, %v2235_v20  ;;  %v226_v42 = vadd.s32 80, %v2235_v20  ;;  %s2905_s27 = scalar_lea.vmem %s3014_s4, %s1718_s11 }
  0x1d   : > { %v670_v3 = vld [vmem:[%s206_s14] sm:$0xff]  ;;  %v671_v4 = vld [vmem:[%s206_s14 + $0x8] sm:$0xff]  ;;  %v672_v7 = vld [vmem:[%s206_s14 + $0x10] sm:$0xff]  ;;  %v2245_v24 = vadd.s32 %v2241_v22, %v217_v21  ;;  %v2248_v25 = vadd.s32 %v2241_v22, %v225_v23  ;;  %3043 = vst [vmem:[#allocation10_spill] sm:$0xff] %v2253_v27  ;;  %v2262_v33 = vadd.s32 %v2241_v22, %v219_v26  ;;  %v252_v34 = vmul.u32 32, %v2253_v27  ;;  %s1628_s9 = sshll.u32 %s201_s8, 4  ;;  %s2943_s9 = int_to_ptr.vmem [resolvable:$true] %s1628_s9 }
  0x1e   : > { %v678_v5 = vld [vmem:[%s206_s14 + $0x40] sm:$0xff]  ;;  %1829 = vmatprep.mubr.msk.f32.mxu0 %vm695_vm0, %v670_v3  ;;  %v679_v6 = vld [vmem:[%s206_s14 + $0x48] sm:$0xff]  ;;  %v680_v8 = vld [vmem:[%s206_s14 + $0x50] sm:$0xff]  ;;  %s284_s17 = smul.u32 2654435769, %s214_s16  ;;  %v2266_v35 = vadd.s32 %v2241_v22, %v227_v28  ;;  %v2269_v36 = vadd.s32 %v2241_v22, %v224_v29  ;;  %v221_v47 = vadd.s32 40, %v2235_v20  ;;  %v2284_v48 = vadd.s32 %v2241_v22, %v218_v39 }
  0x1f   : > { %1841 = vmatprep.mubr.msk.f32.mxu1 %vm695_vm0, %v678_v5  ;;  %1830 = vmatmul.mubr.msk.f32.vlgmr.msra.gmra.mrb[0].mxu0 %vm695_vm0, %v671_v4  ;;  %v673_v9 = vld [vmem:[%s206_s14 + $0x18] sm:$0xff]  ;;  %v674_v11 = vld [vmem:[%s206_s14 + $0x20] sm:$0xff]  ;;  %v675_v13 = vld [vmem:[%s206_s14 + $0x28] sm:$0xff]  ;;  %3041 = vst [vmem:[#allocation8_spill] sm:$0xff] %v2245_v24  ;;  %v253_v31 = vmul.u32 32, %v2245_v24  ;;  %v261_v32 = vmul.u32 32, %v2248_v25  ;;  %v268_v43 = vadd.s32 %v252_v34, %v2257_v30  ;;  %v2290_v52 = vadd.s32 %v2241_v22, %v226_v42 }
  0x20   : > { %1842 = vmatmul.mubr.msk.f32.vlgmr.msra.gmra.mrb[0].mxu1 %vm695_vm0, %v679_v6  ;;  %1832 = vmatprep.mubr.msk.f32.mxu0 %vm695_vm0, %v672_v7  ;;  %v681_v10 = vld [vmem:[%s206_s14 + $0x58] sm:$0xff]  ;;  %v682_v12 = vld [vmem:[%s206_s14 + $0x60] sm:$0xff]  ;;  %v683_v14 = vld [vmem:[%s206_s14 + $0x68] sm:$0xff]  ;;  %3042 = vst [vmem:[#allocation9_spill] sm:$0xff] %v2248_v25  ;;  %v2272_v38 = vstv %s284_s17  ;;  %v255_v41 = vmul.u32 32, %v2262_v33  ;;  %v263_v44 = vmul.u32 32, %v2266_v35  ;;  %v2296_v57 = vadd.s32 %v2241_v22, %v221_v47 }
  0x21   : > { %1844 = vmatprep.mubr.msk.f32.mxu1 %vm695_vm0, %v680_v8  ;;  %v676_v15 = vld [vmem:[%s206_s14 + $0x30] sm:$0xff]  ;;  %v677_v17 = vld [vmem:[%s206_s14 + $0x38] sm:$0xff]  ;;  %3044 = vst [vmem:[#allocation11_spill] sm:$0xff] %v2262_v33  ;;  %3045 = vst [vmem:[#allocation12_spill] sm:$0xff] %v2266_v35  ;;  %v269_v37 = vadd.s32 %v253_v31, %v2257_v30  ;;  %v277_v40 = vadd.s32 %v261_v32, %v2257_v30  ;;  %v260_v45 = vmul.u32 32, %v2269_v36  ;;  %v220_v49 = vadd.s32 32, %v2235_v20 }
  0x22   : > { %v684_v16 = vld [vmem:[%s206_s14 + $0x70] sm:$0xff]  ;;  %v685_v18 = vld [vmem:[%s206_s14 + $0x78] sm:$0xff]  ;;  %3046 = vst [vmem:[#allocation13_spill] sm:$0xff] %v2269_v36  ;;  %3047 = vst [vmem:[#allocation14_spill] sm:$0xff] %v2284_v48  ;;  %v271_v51 = vadd.s32 %v255_v41, %v2257_v30  ;;  %v286_v53 = vadd.s32 %v2272_v38, %v268_v43  ;;  %v279_v54 = vadd.s32 %v263_v44, %v2257_v30  ;;  %v229_v58 = vadd.s32 104, %v2235_v20  ;;  %s1611_s0 = scalar_lea.sflag [#allocation5], %s199_s6 }
  0x23   : > { %1833 = vmatmul.mubr.msk.f32.gmra.mrb[2].mxu0 %vm695_vm0, %v673_v9  ;;  %v287_v46 = vadd.s32 %v2272_v38, %v269_v37  ;;  %v295_v50 = vadd.s32 %v2272_v38, %v277_v40  ;;  %3048 = vst [vmem:[#allocation15_spill] sm:$0xff] %v2290_v52  ;;  %v276_v55 = vadd.s32 %v260_v45, %v2257_v30  ;;  %3049 = vst [vmem:[#allocation16_spill] sm:$0xff] %v2296_v57  ;;  %s2058_s13 = scalar_lea.vmem %s2943_s9, 128  ;;  %s2122_s14 = smov [#allocation4]  }
  0x24   : > { %1845 = vmatmul.mubr.msk.f32.gmra.mrb[2].mxu1 %vm695_vm0, %v681_v10  ;;  %1835 = vmatprep.mubr.msk.f32.mxu0 %vm695_vm0, %v674_v11  ;;  %v254_v59 = vmul.u32 32, %v2284_v48  ;;  %v2301_v60 = vadd.s32 %v2241_v22, %v220_v49  ;;  %v228_v61 = vadd.s32 96, %v2235_v20  ;;  %v289_v63 = vadd.s32 %v2272_v38, %v271_v51  ;;  %p2059_p11 = scmp.ne.s32.totalorder %s2943_s9, %s2058_s13  ;;  %s2062_s15 = sshll.u32 %s2122_s14, 4  ;;  %s2063_s15 = int_to_ptr.vmem [resolvable:$false] %s2062_s15 }
  0x25   : > { %1847 = vmatprep.mubr.msk.f32.mxu1 %vm695_vm0, %v682_v12  ;;  %v1723_v56 = vshrl.u32 %v287_v46, 16  ;;  %v1731_v62 = vshrl.u32 %v295_v50, 16  ;;  %v262_v0 = vmul.u32 32, %v2290_v52  ;;  %v223_v1 = vadd.s32 56, %v2235_v20  ;;  %s2064_s16 = scalar_lea.vmem %s2063_s15, 256  ;;  %p2065_p0 = scmp.lt.s32.totalorder %s2943_s9, %s2063_s15 }
  0x26   : > { %3050 = vst [vmem:[#allocation17_spill] sm:$0xff] %v2301_v60  ;;  %v1722_v2 = vshrl.u32 %v286_v53, 16  ;;  %v297_v3 = vadd.s32 %v2272_v38, %v279_v54  ;;  %v294_v4 = vadd.s32 %v2272_v38, %v276_v55  ;;  %v222_v5 = vadd.s32 48, %v2235_v20  ;;  %p2060_p12 = pnand %p2059_p11, %p2194_p5  ;;  %p2066_p1 = scmp.lt.s32.totalorder %s2064_s16, %s2058_s13 }
  0x27   : > { %1836 = vmatmul.mubr.msk.f32.gmra.mrb[4].mxu0 %vm695_vm0, %v675_v13  ;;  %v335_v6 = vxor.u32 %v1723_v56, %v287_v46  ;;  %v257_v7 = vmul.u32 32, %v2296_v57  ;;  %v2312_v8 = vadd.s32 %v2241_v22, %v229_v58  ;;  %v270_v9 = vadd.s32 %v254_v59, %v2257_v30 }
  0x28   : > { %1848 = vmatmul.mubr.msk.f32.gmra.mrb[4].mxu1 %vm695_vm0, %v683_v14  ;;  %1838 = vmatprep.mubr.msk.f32.mxu0 %vm695_vm0, %v676_v15  ;;  %v256_v10 = vmul.u32 32, %v2301_v60  ;;  %v2317_v11 = vadd.s32 %v2241_v22, %v228_v61  ;;  %v343_v12 = vxor.u32 %v1731_v62, %v295_v50  ;;  %v1725_v13 = vshrl.u32 %v289_v63, 16  ;;  %p2061_p13 = pneg %p2060_p12  ;;  %p2067_p2 = por %p2066_p1, %p2065_p0 }
  0x29   : > { %1850 = vmatprep.mubr.msk.f32.mxu1 %vm695_vm0, %v684_v16  ;;  %3051 = vst [vmem:[#allocation18_spill] sm:$0xff] %v2312_v8  ;;  %v278_v14 = vadd.s32 %v262_v0, %v2257_v30  ;;  %v2321_v15 = vadd.s32 %v2241_v22, %v223_v1  ;;  %v334_v16 = vxor.u32 %v1722_v2, %v286_v53  ;;  %v351_v21 = vmul.u32 2246822507, %v335_v6 }
  0x2a   : > { %3052 = vst [vmem:[#allocation19_spill] sm:$0xff] %v2317_v11  ;;  %v2324_v19 = vadd.s32 %v2241_v22, %v222_v5  ;;  %v273_v23 = vadd.s32 %v257_v7, %v2257_v30  ;;  %v265_v26 = vmul.u32 32, %v2312_v8  ;;  %v231_v28 = vadd.s32 120, %v2235_v20  ;;  %p2068_p3 = pnand %p2067_p2, %p2061_p13 }
  0x2b   : > { %1839 = vmatmul.mubr.msk.f32.gmra.mrb[6].mxu0 %vm695_vm0, %v677_v17  ;;  %3053 = vst [vmem:[#allocation20_spill] sm:$0xff] %v2321_v15  ;;  %v1733_v17 = vshrl.u32 %v297_v3, 16  ;;  %v288_v29 = vadd.s32 %v2272_v38, %v270_v9  ;;  %v272_v31 = vadd.s32 %v256_v10, %v2257_v30  ;;  %v264_v32 = vmul.u32 32, %v2317_v11 }
  0x2c   : > { %1851 = vmatmul.mubr.msk.f32.gmra.mrb[6].mxu1 %vm695_vm0, %v685_v18  ;;  %v1730_v18 = vshrl.u32 %v294_v4, 16  ;;  %3054 = vst [vmem:[#allocation21_spill] sm:$0xff] %v2324_v19  ;;  %v230_v34 = vadd.s32 112, %v2235_v20  ;;  %v359_v37 = vmul.u32 2246822507, %v343_v12  ;;  %v337_v39 = vxor.u32 %v1725_v13, %v289_v63 }
  0x2d   : > { %v296_v40 = vadd.s32 %v2272_v38, %v278_v14  ;;  %v259_v41 = vmul.u32 32, %v2321_v15  ;;  %v350_v42 = vmul.u32 2246822507, %v334_v16  ;;  %v345_v43 = vxor.u32 %v1733_v17, %v297_v3 }
  0x2e   : > { %v342_v44 = vxor.u32 %v1730_v18, %v294_v4  ;;  %v258_v45 = vmul.u32 32, %v2324_v19  ;;  %v1739_v46 = vshrl.u32 %v351_v21, 13  ;;  %v291_v47 = vadd.s32 %v2272_v38, %v273_v23 }
  0x2f   : > { %v281_v49 = vadd.s32 %v265_v26, %v2257_v30  ;;  %v2339_v50 = vadd.s32 %v2241_v22, %v231_v28  ;;  %v1724_v51 = vshrl.u32 %v288_v29, 16  ;;  %v290_v53 = vadd.s32 %v2272_v38, %v272_v31 }
  0x30   : > { %v280_v54 = vadd.s32 %v264_v32, %v2257_v30  ;;  %v2344_v55 = vadd.s32 %v2241_v22, %v230_v34  ;;  %v1747_v56 = vshrl.u32 %v359_v37, 13  ;;  %v353_v58 = vmul.u32 2246822507, %v337_v39 }
  0x31   : > { %3055 = vst [vmem:[#allocation22_spill] sm:$0xff] %v2339_v50  ;;  %v1732_v59 = vshrl.u32 %v296_v40, 16  ;;  %v275_v61 = vadd.s32 %v259_v41, %v2257_v30  ;;  %v1738_v62 = vshrl.u32 %v350_v42, 13  ;;  %v361_v63 = vmul.u32 2246822507, %v345_v43 }
  0x32   : > { %3056 = vst [vmem:[#allocation23_spill] sm:$0xff] %v2344_v55  ;;  %v358_v0 = vmul.u32 2246822507, %v342_v44  ;;  %v274_v1 = vadd.s32 %v258_v45, %v2257_v30  ;;  %v399_v2 = vxor.u32 %v1739_v46, %v351_v21  ;;  %v1727_v3 = vshrl.u32 %v291_v47, 16 }
  0x33   : > { %v299_v4 = vadd.s32 %v2272_v38, %v281_v49  ;;  %v267_v5 = vmul.u32 32, %v2339_v50  ;;  %v336_v6 = vxor.u32 %v1724_v51, %v288_v29  ;;  %v1726_v7 = vshrl.u32 %v290_v53, 16 }
  0x34   : > { %v298_v22 = vadd.s32 %v2272_v38, %v280_v54  ;;  %v266_v9 = vmul.u32 32, %v2344_v55  ;;  %v407_v10 = vxor.u32 %v1747_v56, %v359_v37  ;;  %v1741_v12 = vshrl.u32 %v353_v58, 13 }
  0x35   : > { %v344_v13 = vxor.u32 %v1732_v59, %v296_v40  ;;  %v293_v14 = vadd.s32 %v2272_v38, %v275_v61  ;;  %v398_v16 = vxor.u32 %v1738_v62, %v350_v42  ;;  %v1749_v17 = vshrl.u32 %v361_v63, 13 }
  0x36   : > { %v1746_v18 = vshrl.u32 %v358_v0, 13  ;;  %v292_v21 = vadd.s32 %v2272_v38, %v274_v1  ;;  %v415_v23 = vmul.u32 3266489909, %v399_v2  ;;  %v339_v26 = vxor.u32 %v1727_v3, %v291_v47 }
  0x37   : > { %v1735_v28 = vshrl.u32 %v299_v4, 16  ;;  %v283_v29 = vadd.s32 %v267_v5, %v2257_v30  ;;  %v352_v31 = vmul.u32 2246822507, %v336_v6  ;;  %v338_v32 = vxor.u32 %v1726_v7, %v290_v53 }
  0x38   : > { %v1734_v34 = vshrl.u32 %v298_v22, 16  ;;  %v282_v39 = vadd.s32 %v266_v9, %v2257_v30  ;;  %v423_v37 = vmul.u32 3266489909, %v407_v10  ;;  %v401_v41 = vxor.u32 %v1741_v12, %v353_v58 }
  0x39   : > { %v360_v40 = vmul.u32 2246822507, %v344_v13  ;;  %v1729_v43 = vshrl.u32 %v293_v14, 16  ;;  %v414_v44 = vmul.u32 3266489909, %v398_v16  ;;  %v409_v42 = vxor.u32 %v1749_v17, %v361_v63 }
  0x3a   : > { %v406_v45 = vxor.u32 %v1746_v18, %v358_v0  ;;  %v1728_v46 = vshrl.u32 %v292_v21, 16  ;;  %v1755_v49 = vshrl.u32 %v415_v23, 16  ;;  %v355_v51 = vmul.u32 2246822507, %v339_v26 }
  0x3b   : > { %v347_v54 = vxor.u32 %v1735_v28, %v299_v4  ;;  %v301_v47 = vadd.s32 %v2272_v38, %v283_v29  ;;  %v1740_v56 = vshrl.u32 %v352_v31, 13  ;;  %v354_v59 = vmul.u32 2246822507, %v338_v32 }
  0x3c   : > { %v346_v61 = vxor.u32 %v1734_v34, %v298_v22  ;;  %v300_v53 = vadd.s32 %v2272_v38, %v282_v39  ;;  %v1763_v62 = vshrl.u32 %v423_v37, 16  ;;  %v417_v1 = vmul.u32 3266489909, %v401_v41 }
  0x3d   : > { %v1748_v2 = vshrl.u32 %v360_v40, 13  ;;  %v341_v58 = vxor.u32 %v1729_v43, %v293_v14  ;;  %v1754_v3 = vshrl.u32 %v414_v44, 16  ;;  %v425_v5 = vmul.u32 3266489909, %v409_v42 }
  0x3e   : > { %v422_v6 = vmul.u32 3266489909, %v406_v45  ;;  %v340_v63 = vxor.u32 %v1728_v46, %v292_v21  ;;  %v463_v0 = vxor.u32 %v1755_v49, %v415_v23  ;;  %v1743_v7 = vshrl.u32 %v355_v51, 13 }
  0x3f   : > { %v363_v9 = vmul.u32 2246822507, %v347_v54  ;;  %v1737_v10 = vshrl.u32 %v301_v47, 16  ;;  %v400_v4 = vxor.u32 %v1740_v56, %v352_v31  ;;  %v1742_v12 = vshrl.u32 %v354_v59, 13 }
  0x40   : > { %v362_v13 = vmul.u32 2246822507, %v346_v61  ;;  %v1736_v16 = vshrl.u32 %v300_v53, 16  ;;  %v471_v17 = vxor.u32 %v1763_v62, %v423_v37  ;;  %v1757_v22 = vshrl.u32 %v417_v1, 16 }
  0x41   : > { %v408_v18 = vxor.u32 %v1748_v2, %v360_v40  ;;  %v357_v38 = vmul.u32 2246822507, %v341_v58  ;;  %v462_v26 = vxor.u32 %v1754_v3, %v414_v44  ;;  %v1765_v28 = vshrl.u32 %v425_v5, 16 }
  0x42   : > { %v1762_v29 = vshrl.u32 %v422_v6, 16  ;;  %v356_v14 = vmul.u32 2246822507, %v340_v63  ;;  %v1771_v32 = vshrl.u32 %v463_v0, 8  ;;  %v403_v34 = vxor.u32 %v1743_v7, %v355_v51 }
  0x43   : > { %v1751_v39 = vshrl.u32 %v363_v9, 13  ;;  %v349_v21 = vxor.u32 %v1737_v10, %v301_v47  ;;  %v416_v23 = vmul.u32 3266489909, %v400_v4  ;;  %v402_v41 = vxor.u32 %v1742_v12, %v354_v59 }
  0x44   : > { %v1750_v43 = vshrl.u32 %v362_v13, 13  ;;  %v348_v42 = vxor.u32 %v1736_v16, %v300_v53  ;;  %v1779_v31 = vshrl.u32 %v471_v17, 8  ;;  %v465_v45 = vxor.u32 %v1757_v22, %v417_v1 }
  0x45   : > { %v424_v46 = vmul.u32 3266489909, %v408_v18  ;;  %v1745_v49 = vshrl.u32 %v357_v38, 13  ;;  %v1770_v37 = vshrl.u32 %v462_v26, 8  ;;  %v473_v54 = vxor.u32 %v1765_v28, %v425_v5 }
  0x46   : > { %v470_v40 = vxor.u32 %v1762_v29, %v422_v6  ;;  %v1744_v56 = vshrl.u32 %v356_v14, 13  ;;  %v511_v44 = vcvt.s32.f32 %v1771_v32  ;;  %v419_v61 = vmul.u32 3266489909, %v403_v34 }
  0x47   : > { %v411_v62 = vxor.u32 %v1751_v39, %v363_v9  ;;  %v365_v2 = vmul.u32 2246822507, %v349_v21  ;;  %v1756_v58 = vshrl.u32 %v416_v23, 16  ;;  %v418_v51 = vmul.u32 3266489909, %v402_v41 }
  0x48   : > { %v410_v3 = vxor.u32 %v1750_v43, %v362_v13  ;;  %v364_v47 = vmul.u32 2246822507, %v348_v42  ;;  %v519_v63 = vcvt.s32.f32 %v1779_v31  ;;  %v1773_v59 = vshrl.u32 %v465_v45, 8 }
  0x49   : > { %v1764_v0 = vshrl.u32 %v424_v46, 16  ;;  %v405_v53 = vxor.u32 %v1745_v49, %v357_v38  ;;  %v510_v7 = vcvt.s32.f32 %v1770_v37  ;;  %v1781_v1 = vshrl.u32 %v473_v54, 8 }
  0x4a   : > { %v1778_v10 = vshrl.u32 %v470_v40, 8  ;;  %v404_v4 = vxor.u32 %v1744_v56, %v356_v14  ;;  %v527_v12 = vmul.f32 5.9604645e-08, %v511_v44  ;;  %v1759_v5 = vshrl.u32 %v419_v61, 16 }
  0x4b   : > { %v427_v6 = vmul.u32 3266489909, %v411_v62  ;;  %v1753_v16 = vshrl.u32 %v365_v2, 13  ;;  %v464_v17 = vxor.u32 %v1756_v58, %v416_v23  ;;  %v1758_v22 = vshrl.u32 %v418_v51, 16 }
  0x4c   : > { %v426_v9 = vmul.u32 3266489909, %v410_v3  ;;  %v1752_v18 = vshrl.u32 %v364_v47, 13  ;;  %v535_v26 = vmul.f32 5.9604645e-08, %v519_v63  ;;  %v513_v28 = vcvt.s32.f32 %v1773_v59 }
  0x4d   : > { %v472_v13 = vxor.u32 %v1764_v0, %v424_v46  ;;  %v421_v29 = vmul.u32 3266489909, %v405_v53  ;;  %v526_v32 = vmul.f32 5.9604645e-08, %v510_v7  ;;  %v521_v34 = vcvt.s32.f32 %v1781_v1 }
  0x4e   : > { %v518_v39 = vcvt.s32.f32 %v1778_v10  ;;  %v420_v38 = vmul.u32 3266489909, %v404_v4  ;;  %v543_v21 = vadd.f32 1e-20, %v527_v12  ;;  %v467_v41 = vxor.u32 %v1759_v5, %v419_v61 }
  0x4f   : > { %v1767_v43 = vshrl.u32 %v427_v6, 16  ;;  %v413_v14 = vxor.u32 %v1753_v16, %v365_v2  ;;  %v1772_v42 = vshrl.u32 %v464_v17, 8  ;;  %v466_v31 = vxor.u32 %v1758_v22, %v418_v51 }
  0x50   : > { %v1766_v45 = vshrl.u32 %v426_v9, 16  ;;  %v412_v49 = vxor.u32 %v1752_v18, %v364_v47  ;;  %v551_v23 = vadd.f32 1e-20, %v535_v26  ;;  %v529_v37 = vmul.f32 5.9604645e-08, %v513_v28 }
  0x51   : > { %v1780_v54 = vshrl.u32 %v472_v13, 8  ;;  %v1761_v40 = vshrl.u32 %v421_v29, 16  ;;  %v542_v56 = vadd.f32 1e-20, %v526_v32  ;;  %v537_v44 = vmul.f32 5.9604645e-08, %v521_v34 }
  0x52   : > { %v534_v46 = vmul.f32 5.9604645e-08, %v518_v39  ;;  %v1760_v62 = vshrl.u32 %v420_v38, 16  ;;  %1898 = vlog2.f32 %v543_v21  ;;  %v1775_v58 = vshrl.u32 %v467_v41, 8 }
  0x53   : > { %v475_v3 = vxor.u32 %v1767_v43, %v427_v6  ;;  %v429_v63 = vmul.u32 3266489909, %v413_v14  ;;  %v512_v59 = vcvt.s32.f32 %v1772_v42  ;;  %v1774_v61 = vshrl.u32 %v466_v31, 8 }
  0x54   : > { %v474_v0 = vxor.u32 %v1766_v45, %v426_v9  ;;  %v428_v2 = vmul.u32 3266489909, %v412_v49  ;;  %1900 = vlog2.f32 %v551_v23  ;;  %v545_v51 = vadd.f32 1e-20, %v529_v37 }
  0x55   : > { %v520_v53 = vcvt.s32.f32 %v1780_v54  ;;  %v469_v47 = vxor.u32 %v1761_v40, %v421_v29  ;;  %1902 = vlog2.f32 %v542_v56  ;;  %v553_v7 = vadd.f32 1e-20, %v537_v44 }
  0x56   : > { %v468_v1 = vxor.u32 %v1760_v62, %v420_v38  ;;  %v550_v10 = vadd.f32 1e-20, %v534_v46  ;;  %v515_v4 = vcvt.s32.f32 %v1775_v58  ;;  %v1783_v12 = vshrl.u32 %v475_v3, 8 }
  0x57   : > { %v1769_v5 = vshrl.u32 %v429_v63, 16  ;;  %v528_v16 = vmul.f32 5.9604645e-08, %v512_v59  ;;  %v514_v17 = vcvt.s32.f32 %v1774_v61  ;;  %v1782_v22 = vshrl.u32 %v474_v0, 8 }
  0x58   : > { %v1768_v6 = vshrl.u32 %v428_v2, 16  ;;  %1904 = vlog2.f32 %v545_v51  ;;  %v536_v18 = vmul.f32 5.9604645e-08, %v520_v53  ;;  %v1777_v26 = vshrl.u32 %v469_v47, 8 }
  0x59   : > { %1906 = vlog2.f32 %v553_v7  ;;  %v1776_v9 = vshrl.u32 %v468_v1, 8  ;;  %v531_v28 = vmul.f32 5.9604645e-08, %v515_v4  ;;  %v523_v13 = vcvt.s32.f32 %v1783_v12 }
  0x5a   : > { %1908 = vlog2.f32 %v550_v10  ;;  %v477_v29 = vxor.u32 %v1769_v5, %v429_v63  ;;  %v544_v32 = vadd.f32 1e-20, %v528_v16  ;;  %v530_v34 = vmul.f32 5.9604645e-08, %v514_v17 }
  0x5b   : > { %v522_v39 = vcvt.s32.f32 %v1782_v22  ;;  %v476_v38 = vxor.u32 %v1768_v6, %v428_v2  ;;  %v552_v41 = vadd.f32 1e-20, %v536_v18  ;;  %v517_v43 = vcvt.s32.f32 %v1777_v26 }
  0x5c   : > { %v1899_v21 = vpop.eup %1898  ;;  %v516_v14 = vcvt.s32.f32 %v1776_v9  ;;  %v547_v31 = vadd.f32 1e-20, %v531_v28  ;;  %v539_v45 = vmul.f32 5.9604645e-08, %v523_v13  ;;  %v1785_v49 = vshrl.u32 %v477_v29, 8 }
  0x5d   : > { %1910 = vlog2.f32 %v544_v32  ;;  %v546_v37 = vadd.f32 1e-20, %v530_v34  ;;  %v538_v54 = vmul.f32 5.9604645e-08, %v522_v39  ;;  %v1784_v40 = vshrl.u32 %v476_v38, 8 }
  0x5e   : > { %v1901_v42 = vpop.eup %1900  ;;  %v561_v56 = vmul.f32 0.6931472, %v1899_v21  ;;  %1912 = vlog2.f32 %v552_v41  ;;  %v533_v44 = vmul.f32 5.9604645e-08, %v517_v43  ;;  %v532_v62 = vmul.f32 5.9604645e-08, %v516_v14 }
  0x5f   : > { %v1903_v23 = vpop.eup %1902  ;;  %v577_v46 = vmul.f32 0.6931472, %v1901_v42  ;;  %1914 = vlog2.f32 %v547_v31  ;;  %v555_v3 = vadd.f32 1e-20, %v539_v45  ;;  %v525_v63 = vcvt.s32.f32 %v1785_v49 }
  0x60   : > { %1916 = vlog2.f32 %v546_v37  ;;  %v554_v61 = vadd.f32 1e-20, %v538_v54  ;;  %v524_v0 = vcvt.s32.f32 %v1784_v40  ;;  %v591_v51 = vsub.f32 0.0, %v561_v56 }
  0x61   : > { %v559_v53 = vmul.f32 0.6931472, %v1903_v23  ;;  %v549_v47 = vadd.f32 1e-20, %v533_v44  ;;  %v599_v7 = vsub.f32 0.0, %v577_v46  ;;  %1918 = vlog2.f32 %v555_v3 }
  0x62   : > { %v1905_v58 = vpop.eup %1904  ;;  %v548_v10 = vadd.f32 1e-20, %v532_v62  ;;  %v541_v12 = vmul.f32 5.9604645e-08, %v525_v63  ;;  %1920 = vlog2.f32 %v554_v61  ;;  %v540_v5 = vmul.f32 5.9604645e-08, %v524_v0 }
  0x63   : > { %v1907_v59 = vpop.eup %1906  ;;  %v565_v1 = vmul.f32 0.6931472, %v1905_v58  ;;  %v607_v16 = vadd.f32 1e-20, %v591_v51  ;;  %v590_v17 = vsub.f32 0.0, %v559_v53  ;;  %1922 = vlog2.f32 %v549_v47 }
  0x64   : > { %v1909_v2 = vpop.eup %1908  ;;  %v581_v4 = vmul.f32 0.6931472, %v1907_v59  ;;  %v615_v18 = vadd.f32 1e-20, %v599_v7  ;;  %1924 = vlog2.f32 %v548_v10  ;;  %v557_v13 = vadd.f32 1e-20, %v541_v12 }
  0x65   : > { %v575_v22 = vmul.f32 0.6931472, %v1909_v2  ;;  %v593_v26 = vsub.f32 0.0, %v565_v1  ;;  %v556_v29 = vadd.f32 1e-20, %v540_v5  ;;  %1926 = vlog2.f32 %v607_v16 }
  0x66   : > { %v601_v28 = vsub.f32 0.0, %v581_v4  ;;  %v606_v34 = vadd.f32 1e-20, %v590_v17  ;;  %1928 = vlog2.f32 %v615_v18 }
  0x67   : > { %v1911_v6 = vpop.eup %1910  ;;  %v598_v39 = vsub.f32 0.0, %v575_v22  ;;  %v609_v41 = vadd.f32 1e-20, %v593_v26  ;;  %1930 = vlog2.f32 %v557_v13  ;;  %v2361_v13 = vld [vmem:[%s3013_s3] ss:$0 sm:$0xff] }
  0x68   : > { %v1913_v9 = vpop.eup %1912  ;;  %v563_v38 = vmul.f32 0.6931472, %v1911_v6  ;;  %v617_v14 = vadd.f32 1e-20, %v601_v28  ;;  %1932 = vlog2.f32 %v556_v29 }
  0x69   : > { %v1915_v32 = vpop.eup %1914  ;;  %v579_v43 = vmul.f32 0.6931472, %v1913_v9  ;;  %1934 = vlog2.f32 %v606_v34  ;;  %v614_v45 = vadd.f32 1e-20, %v598_v39 }
  0x6a   : > { %v1917_v21 = vpop.eup %1916  ;;  %v569_v42 = vmul.f32 0.6931472, %v1915_v32  ;;  %v592_v49 = vsub.f32 0.0, %v563_v38  ;;  %1936 = vlog2.f32 %v609_v41 }
  0x6b   : > { %v1919_v31 = vpop.eup %1918  ;;  %v567_v23 = vmul.f32 0.6931472, %v1917_v21  ;;  %v600_v54 = vsub.f32 0.0, %v579_v43  ;;  %1938 = vlog2.f32 %v617_v14 }
  0x6c   : > { %v1921_v37 = vpop.eup %1920  ;;  %v595_v44 = vsub.f32 0.0, %v569_v42  ;;  %v585_v46 = vmul.f32 0.6931472, %v1919_v31  ;;  %1940 = vlog2.f32 %v614_v45  ;;  %v608_v62 = vadd.f32 1e-20, %v592_v49 }
  0x6d   : > { %v1923_v40 = vpop.eup %1922  ;;  %v594_v58 = vsub.f32 0.0, %v567_v23  ;;  %v583_v3 = vmul.f32 0.6931472, %v1921_v37  ;;  %v616_v63 = vadd.f32 1e-20, %v600_v54 }
  0x6e   : > { %v1925_v56 = vpop.eup %1924  ;;  %v573_v59 = vmul.f32 0.6931472, %v1923_v40  ;;  %v611_v51 = vadd.f32 1e-20, %v595_v44  ;;  %v603_v53 = vsub.f32 0.0, %v585_v46  ;;  %1942 = vlog2.f32 %v608_v62 }
  0x6f   : > { %v1927_v61 = vpop.eup %1926  ;;  %v571_v0 = vmul.f32 0.6931472, %v1925_v56  ;;  %v610_v7 = vadd.f32 1e-20, %v594_v58  ;;  %v602_v1 = vsub.f32 0.0, %v583_v3  ;;  %1944 = vlog2.f32 %v616_v63 }
  0x70   : > { %v1929_v2 = vpop.eup %1928  ;;  %v597_v4 = vsub.f32 0.0, %v573_v59  ;;  %v625_v16 = vmul.f32 0.6931472, %v1927_v61  ;;  %1946 = vlog2.f32 %v611_v51  ;;  %v619_v6 = vadd.f32 1e-20, %v603_v53 }
  0x71   : > { %v1931_v47 = vpop.eup %1930  ;;  %v641_v5 = vmul.f32 0.6931472, %v1929_v2  ;;  %v596_v17 = vsub.f32 0.0, %v571_v0  ;;  %1948 = vlog2.f32 %v610_v7  ;;  %v618_v9 = vadd.f32 1e-20, %v602_v1 }
  0x72   : > { %v1933_v10 = vpop.eup %1932  ;;  %v589_v18 = vmul.f32 0.6931472, %v1931_v47  ;;  %v613_v32 = vadd.f32 1e-20, %v597_v4  ;;  %v655_v38 = vsub.f32 0.0, %v625_v16  ;;  %1950 = vlog2.f32 %v619_v6 }
  0x73   : > { %v1935_v12 = vpop.eup %1934  ;;  %v587_v28 = vmul.f32 0.6931472, %v1933_v10  ;;  %v663_v39 = vsub.f32 0.0, %v641_v5  ;;  %v612_v41 = vadd.f32 1e-20, %v596_v17  ;;  %1952 = vlog2.f32 %v618_v9 }
  0x74   : > { %v1937_v22 = vpop.eup %1936  ;;  %v623_v29 = vmul.f32 0.6931472, %v1935_v12  ;;  %v605_v31 = vsub.f32 0.0, %v589_v18  ;;  %1954 = vlog2.f32 %v613_v32 }
  0x75   : > { %v1939_v26 = vpop.eup %1938  ;;  %v629_v21 = vmul.f32 0.6931472, %v1937_v22  ;;  %v604_v54 = vsub.f32 0.0, %v587_v28  ;;  %1956 = vlog2.f32 %v612_v41 }
  0x76   : > { %v1941_v34 = vpop.eup %1940  ;;  %v645_v42 = vmul.f32 0.6931472, %v1939_v26  ;;  %v654_v56 = vsub.f32 0.0, %v623_v29  ;;  %v621_v53 = vadd.f32 1e-20, %v605_v31 }
  0x77   : > { %v639_v44 = vmul.f32 0.6931472, %v1941_v34  ;;  %v657_v3 = vsub.f32 0.0, %v629_v21  ;;  %v620_v12 = vadd.f32 1e-20, %v604_v54 }
  0x78   : > { %v1943_v46 = vpop.eup %1942  ;;  %v665_v51 = vsub.f32 0.0, %v645_v42  ;;  %1958 = vlog2.f32 %v621_v53 }
  0x79   : > { %v1945_v63 = vpop.eup %1944  ;;  %v662_v22 = vsub.f32 0.0, %v639_v44  ;;  %v627_v6 = vmul.f32 0.6931472, %v1943_v46  ;;  %1960 = vlog2.f32 %v620_v12 }
  0x7a   : > { %v1947_v5 = vpop.eup %1946  ;;  %v643_v18 = vmul.f32 0.6931472, %v1945_v63 }
  0x7b   : > { %v1949_v16 = vpop.eup %1948  ;;  %v633_v41 = vmul.f32 0.6931472, %v1947_v5 }
  0x7c   : > { %v664_v46 = vsub.f32 0.0, %v643_v18 }
  0xf2   : > { %v1831_v43 = vpop.f32.mrb[0].mxu0 }
  0xf3   : > { %v1843_v14 = vpop.f32.mrb[0].mxu1  ;;  %v2364_v45 = vadd.f32 %v1831_v43, %v2361_v13  ;;  %v810_v49 = vpop.f32.mrb[1].mxu0 }
  0xf4   : > { %v2367_v23 = vadd.f32 %v1843_v14, %v2361_v13  ;;  %v850_v37 = vpop.f32.mrb[1].mxu1  ;;  %v2370_v40 = vadd.f32 %v2361_v13, %v810_v49  ;;  %v1951_v43 = vpop.eup %1950  ;;  %v631_v14 = vmul.f32 0.6931472, %v1949_v16  ;;  %v656_v49 = vsub.f32 0.0, %v627_v6 }
  0xf5   : > { %v1246_v62 = vsel %vm905_vm1, %v2364_v45, -inf  ;;  %v2380_v2 = vadd.f32 %v2364_v45, %v655_v38  ;;  %v2394_v26 = vadd.f32 %v2361_v13, %v850_v37  ;;  %v1953_v42 = vpop.eup %1952  ;;  %v649_v53 = vmul.f32 0.6931472, %v1951_v43 }
  0xf6   : > { %v2375_v58 = vadd.f32 %v2367_v23, %v663_v39  ;;  %1247 = vmax.xlane.f32.xlu1 %v1246_v62  ;;  %v1834_v59 = vpop.f32.mrb[2].mxu0  ;;  %v1243_v61 = vsel %vm905_vm1, %v2370_v40, -inf  ;;  %v2399_v28 = vadd.f32 %v2370_v40, %v654_v56  ;;  %v1955_v37 = vpop.eup %1954  ;;  %v647_v12 = vmul.f32 0.6931472, %v1953_v42 }
  0xf7   : > { %v1846_v0 = vpop.f32.mrb[2].mxu1  ;;  %v2383_v47 = vadd.f32 %v1834_v59, %v2361_v13  ;;  %1244 = vmax.xlane.f32.xlu0 %v1243_v61  ;;  %v820_v7 = vpop.f32.mrb[3].mxu0  ;;  %v909_v9 = vsel %vm905_vm1, %v2380_v2, -inf  ;;  %v2415_v44 = vadd.f32 %v2394_v26, %v662_v22  ;;  %v637_v6 = vmul.f32 0.6931472, %v1955_v37 }
  0xf8   : > { %v933_v1 = vsel %vm905_vm1, %v2375_v58, -inf  ;;  %v2388_v10 = vadd.f32 %v1846_v0, %v2361_v13  ;;  %v860_v4 = vpop.f32.mrb[3].mxu1  ;;  %v2407_v31 = vadd.f32 %v2361_v13, %v820_v7  ;;  %v906_v56 = vsel %vm905_vm1, %v2399_v28, -inf  ;;  %v1957_v63 = vpop.eup %1956 }
  0xf9   : > { %v2391_v17 = vadd.f32 %v2383_v47, %v657_v3  ;;  %v2410_v54 = vadd.f32 %v2361_v13, %v860_v4  ;;  %v659_v0 = vsub.f32 0.0, %v633_v41  ;;  %v658_v4 = vsub.f32 0.0, %v631_v14 }
  0xfa   : > { %934 = vmax.xlane.f32.xlu1 %v933_v1  ;;  %v1837_v29 = vpop.f32.mrb[4].mxu0  ;;  %v2404_v39 = vadd.f32 %v2388_v10, %v665_v51  ;;  %v2426_v5 = vadd.f32 %v2407_v31, %v656_v49  ;;  %v930_v16 = vsel %vm905_vm1, %v2415_v44, -inf  ;;  %v635_v18 = vmul.f32 0.6931472, %v1957_v63 }
  0xfb   : > { %v1849_v32 = vpop.f32.mrb[4].mxu1  ;;  %910 = vmax.xlane.f32.xlu0 %v909_v9  ;;  %v915_v34 = vsel %vm905_vm1, %v2391_v17, -inf  ;;  %v830_v38 = vpop.f32.mrb[5].mxu0  ;;  %v2420_v61 = vadd.f32 %v1837_v29, %v2361_v13  ;;  %v2431_v22 = vadd.f32 %v2410_v54, %v664_v46  ;;  %v666_v14 = vsub.f32 0.0, %v647_v12 }
  0xfc   : > { %v870_v21 = vpop.f32.mrb[5].mxu1  ;;  %v939_v59 = vsel %vm905_vm1, %v2404_v39, -inf  ;;  %v2423_v1 = vadd.f32 %v2361_v13, %v830_v38  ;;  %v2434_v9 = vadd.f32 %v1849_v32, %v2361_v13  ;;  %v1959_v38 = vpop.eup %1958  ;;  %v912_v49 = vsel %vm905_vm1, %v2426_v5, -inf }
  0xfd   : > { %v2437_v29 = vadd.f32 %v2420_v61, %v659_v0  ;;  %v2440_v41 = vadd.f32 %v2361_v13, %v870_v21  ;;  %v1961_v42 = vpop.eup %1960  ;;  %v936_v32 = vsel %vm905_vm1, %v2431_v22, -inf  ;;  %v661_v37 = vsub.f32 0.0, %v637_v6 }
  0xfe   : > { %916 = vmax.xlane.f32.xlu1 %v915_v34  ;;  %v1840_v62 = vpop.f32.mrb[6].mxu0  ;;  %v667_v34 = vsub.f32 0.0, %v649_v53  ;;  %v2443_v43 = vadd.f32 %v2423_v1, %v658_v4  ;;  %v651_v12 = vmul.f32 0.6931472, %v1961_v42 }
  0xff   : > { %v1852_v3 = vpop.f32.mrb[6].mxu1  ;;  %907 = vmax.xlane.f32.xlu0 %v906_v56  ;;  %v840_v51 = vpop.f32.mrb[7].mxu0  ;;  %v660_v56 = vsub.f32 0.0, %v635_v18  ;;  %v921_v46 = vsel %vm905_vm1, %v2437_v29, -inf  ;;  %v2452_v21 = vadd.f32 %v1840_v62, %v2361_v13  ;;  %v2463_v4 = vadd.f32 %v2440_v41, %v666_v14 }
 0x100   : > { %v880_v7 = vpop.f32.mrb[7].mxu1  ;;  %v2455_v63 = vadd.f32 %v2434_v9, %v667_v34  ;;  %v918_v0 = vsel %vm905_vm1, %v2443_v43, -inf  ;;  %v2460_v53 = vadd.f32 %v2361_v13, %v840_v51  ;;  %v668_v14 = vsub.f32 0.0, %v651_v12 }
 0x101   : > { %v2471_v6 = vadd.f32 %v2452_v21, %v661_v37  ;;  %v942_v51 = vsel %vm905_vm1, %v2463_v4, -inf  ;;  %v2476_v34 = vadd.f32 %v2361_v13, %v880_v7  ;;  %v1252_v37 = vsel %vm905_vm1, %v2383_v47, -inf }
 0x102   : > { %940 = vmax.xlane.f32.xlu1 %v939_v59  ;;  %v653_v59 = vmul.f32 0.6931472, %v1959_v38  ;;  %v945_v62 = vsel %vm905_vm1, %v2455_v63, -inf  ;;  %v2479_v38 = vadd.f32 %v2460_v53, %v660_v56  ;;  %v1249_v56 = vsel %vm905_vm1, %v2407_v31, -inf }
 0x103   : > { %931 = vmax.xlane.f32.xlu0 %v930_v16  ;;  %v2468_v16 = vadd.f32 %v1852_v3, %v2361_v13  ;;  %v927_v3 = vsel %vm905_vm1, %v2471_v6, -inf  ;;  %v1261_v12 = vsel %vm905_vm1, %v2460_v53, -inf }
 0x104   : > { %v669_v18 = vsub.f32 0.0, %v653_v59  ;;  %v1255_v59 = vsel %vm905_vm1, %v2423_v1, -inf }
 0x106   : > { %913 = vmax.xlane.f32.xlu1 %v912_v49  ;;  %v2484_v42 = vadd.f32 %v2468_v16, %v669_v18  ;;  %v924_v49 = vsel %vm905_vm1, %v2479_v38, -inf  ;;  %v1267_v18 = vsel %vm905_vm1, %v2394_v26, -inf }
 0x107   : > { %937 = vmax.xlane.f32.xlu0 %v936_v32  ;;  %v2489_v32 = vadd.f32 %v2476_v34, %v668_v14  ;;  %v1273_v14 = vsel %vm905_vm1, %v2410_v54, -inf }
 0x108   : > { %v951_v13 = vsel %vm905_vm1, %v2484_v42, -inf }
 0x109   : > { %v948_v7 = vsel %vm905_vm1, %v2489_v32, -inf }
 0x10a   : > { %922 = vmax.xlane.f32.xlu1 %v921_v46  ;;  %v1258_v46 = vsel %vm905_vm1, %v2420_v61, -inf }
 0x10b   : > { %919 = vmax.xlane.f32.xlu0 %v918_v0  ;;  %v1264_v0 = vsel %vm905_vm1, %v2452_v21, -inf }
 0x10e   : > { %946 = vmax.xlane.f32.xlu1 %v945_v62  ;;  %v1270_v62 = vsel %vm905_vm1, %v2367_v23, -inf }
 0x10f   : > { %943 = vmax.xlane.f32.xlu0 %v942_v51  ;;  %v1276_v51 = vsel %vm905_vm1, %v2388_v10, -inf }
 0x112   : > { %928 = vmax.xlane.f32.xlu1 %v927_v3  ;;  %v1282_v3 = vsel %vm905_vm1, %v2434_v9, -inf }
 0x113   : > { %925 = vmax.xlane.f32.xlu0 %v924_v49  ;;  %v1279_v49 = vsel %vm905_vm1, %v2440_v41, -inf }
 0x116   : > { %952 = vmax.xlane.f32.xlu1 %v951_v13  ;;  %v1288_v13 = vsel %vm905_vm1, %v2468_v16, -inf }
 0x117   : > { %949 = vmax.xlane.f32.xlu0 %v948_v7  ;;  %v1285_v7 = vsel %vm905_vm1, %v2476_v34, -inf }
 0x11a   : > { %1253 = vmax.xlane.f32.xlu1 %v1252_v37 }
 0x11b   : > { %1250 = vmax.xlane.f32.xlu0 %v1249_v56 }
 0x11e   : > { %1259 = vmax.xlane.f32.xlu1 %v1258_v46 }
 0x11f   : > { %1256 = vmax.xlane.f32.xlu0 %v1255_v59 }
 0x122   : > { %1265 = vmax.xlane.f32.xlu1 %v1264_v0 }
 0x123   : > { %1262 = vmax.xlane.f32.xlu0 %v1261_v12 }
 0x126   : > { %1271 = vmax.xlane.f32.xlu1 %v1270_v62 }
 0x127   : > { %1268 = vmax.xlane.f32.xlu0 %v1267_v18 }
 0x12a   : > { %1277 = vmax.xlane.f32.xlu1 %v1276_v51 }
 0x12b   : > { %1274 = vmax.xlane.f32.xlu0 %v1273_v14 }
 0x12e   : > { %1283 = vmax.xlane.f32.xlu1 %v1282_v3 }
 0x12f   : > { %1280 = vmax.xlane.f32.xlu0 %v1279_v49 }
 0x132   : > { %1289 = vmax.xlane.f32.xlu1 %v1288_v13 }
 0x133   : > { %1286 = vmax.xlane.f32.xlu0 %v1285_v7 }
 0x183   : > { %v1248_v37 = vpop.xlane.xlu1 %1247 }
 0x184   : > { %v2523_v56 = vpop.xlane.xlu0 %1244  ;;  %v2527_v0 = vsub.f32 %v2364_v45, %v1248_v37 }
 0x186   : > { %v1309_v45 = vmul.f32 1.442695, %v2527_v0 }
 0x187   : > { %v935_v46 = vpop.xlane.xlu1 %934 }
 0x188   : > { %vm963_vm2 = vcmp.eq.f32.partialorder %v2375_v58, %v935_v46  ;;  %v911_v59 = vpop.xlane.xlu0 %910  ;;  %1962 = vpow2.f32 %v1309_v45 }
 0x189   : > { %v979_v12 = vsel %vm963_vm2, %v2257_v30, 32  ;;  %vm955_vm3 = vcmp.eq.f32.partialorder %v2380_v2, %v911_v59 }
 0x18a   : > { %v971_v62 = vsel %vm955_vm3, %v2257_v30, 32  ;;  %v2533_v18 = vsel %vm905_vm1, %v979_v12, 2147483647 }
 0x18b   : > { %v2536_v51 = vsel %vm905_vm1, %v971_v62, 2147483647  ;;  %v917_v14 = vpop.xlane.xlu1 %916  ;;  %v1123_v37 = vshra.s32 %v2533_v18, 16 }
 0x18c   : > { %vm957_vm4 = vcmp.eq.f32.partialorder %v2391_v17, %v917_v14  ;;  %v908_v58 = vpop.xlane.xlu0 %907  ;;  %v1003_v3 = vshra.s32 %v2536_v51, 16 }
 0x18d   : > { %v973_v49 = vsel %vm957_vm4, %v2257_v30, 32  ;;  %vm954_vm5 = vcmp.eq.f32.partialorder %v2399_v28, %v908_v58  ;;  %v2560_v58 = vcvt.s32.f32 %v1123_v37 }
 0x18e   : > { %v2544_v2 = vsel %vm905_vm1, %v973_v49, 2147483647  ;;  %v970_v13 = vsel %vm954_vm5, %v2257_v30, 32  ;;  %v2547_v7 = vcvt.s32.f32 %v1003_v3 }
 0x18f   : > { %v2551_v17 = vsel %vm905_vm1, %v970_v13, 2147483647  ;;  %v941_v46 = vpop.xlane.xlu1 %940  ;;  %v1033_v62 = vshra.s32 %v2544_v2, 16 }
 0x190   : > { %vm965_vm6 = vcmp.eq.f32.partialorder %v2404_v39, %v941_v46  ;;  %1006 = vmin.xlane.f32.xlu1 %v2547_v7  ;;  %v932_v59 = vpop.xlane.xlu0 %931  ;;  %v988_v28 = vshra.s32 %v2551_v17, 16 }
 0x191   : > { %v981_v12 = vsel %vm965_vm6, %v2257_v30, 32  ;;  %vm962_vm7 = vcmp.eq.f32.partialorder %v2415_v44, %v932_v59  ;;  %v2576_v46 = vcvt.s32.f32 %v1033_v62 }
 0x192   : > { %v978_v14 = vsel %vm962_vm7, %v2257_v30, 32  ;;  %v2562_v3 = vcvt.s32.f32 %v988_v28  ;;  %v2565_v39 = vsel %vm905_vm1, %v981_v12, 2147483647  ;;  %v1963_v55 = vpop.eup %1962 }
 0x193   : > { %v2568_v49 = vsel %vm905_vm1, %v978_v14, 2147483647  ;;  %v914_v13 = vpop.xlane.xlu1 %913  ;;  %v1342_v11 = vsel %vm905_vm1, %v1963_v55, 0.0  ;;  %v1388_v25 = vmul.f32 %v1963_v55, %v2527_v0 }
 0x194   : > { %vm956_vm8 = vcmp.eq.f32.partialorder %v2426_v5, %v914_v13  ;;  %1126 = vmin.xlane.f32.xlu1 %v2560_v58  ;;  %991 = vmin.xlane.f32.xlu0 %v2562_v3  ;;  %v938_v44 = vpop.xlane.xlu0 %937  ;;  %v1108_v45 = vshra.s32 %v2568_v49, 16  ;;  %v1153_v5 = vshra.s32 %v2565_v39, 16 }
 0x195   : > { %v972_v37 = vsel %vm956_vm8, %v2257_v30, 32  ;;  %vm964_vm9 = vcmp.eq.f32.partialorder %v2431_v22, %v938_v44  ;;  %v1406_v57 = vsel %vm905_vm1, %v1388_v25, 0.0 }
 0x196   : > { %v2579_v59 = vsel %vm905_vm1, %v972_v37, 2147483647  ;;  %v980_v28 = vsel %vm964_vm9, %v2257_v30, 32  ;;  %v2582_v12 = vcvt.s32.f32 %v1108_v45  ;;  %v2597_v45 = vcvt.s32.f32 %v1153_v5 }
 0x197   : > { %v2586_v14 = vsel %vm905_vm1, %v980_v28, 2147483647  ;;  %v923_v13 = vpop.xlane.xlu1 %922  ;;  %v1018_v20 = vshra.s32 %v2579_v59, 16 }
 0x198   : > { %vm959_vm10 = vcmp.eq.f32.partialorder %v2437_v29, %v923_v13  ;;  %1036 = vmin.xlane.f32.xlu1 %v2576_v46  ;;  %1111 = vmin.xlane.f32.xlu0 %v2582_v12  ;;  %v2592_v22 = vpop.xlane.xlu0 %919  ;;  %v1138_v37 = vshra.s32 %v2586_v14, 16 }
 0x199   : > { %v975_v62 = vsel %vm959_vm10, %v2257_v30, 32  ;;  %v2595_v44 = vcvt.s32.f32 %v1018_v20  ;;  %vm958_vm14 = vcmp.eq.f32.partialorder %v2443_v43, %v2592_v22 }
 0x19a   : > { %v2601_v28 = vsel %vm905_vm1, %v975_v62, 2147483647  ;;  %v2609_v13 = vcvt.s32.f32 %v1138_v37 }
 0x19b   : > { %v947_v50 = vpop.xlane.xlu1 %946  ;;  %v1063_v5 = vshra.s32 %v2601_v28, 16 }
 0x19c   : > { %vm967_vm11 = vcmp.eq.f32.partialorder %v2455_v63, %v947_v50  ;;  %1156 = vmin.xlane.f32.xlu1 %v2597_v45  ;;  %1021 = vmin.xlane.f32.xlu0 %v2595_v44  ;;  %v2606_v29 = vpop.xlane.xlu0 %943 }
 0x19d   : > { %v983_v20 = vsel %vm967_vm11, %v2257_v30, 32  ;;  %v2619_v63 = vcvt.s32.f32 %v1063_v5  ;;  %vm966_vm15 = vcmp.eq.f32.partialorder %v2463_v4, %v2606_v29 }
 0x19e   : > { %v2613_v8 = vsel %vm905_vm1, %v983_v20, 2147483647 }
 0x19f   : > { %v929_v62 = vpop.xlane.xlu1 %928  ;;  %v1183_v35 = vshra.s32 %v2613_v8, 16 }
 0x1a0   : > { %1343 = vadd.xlane.f32.xlu1 %v1342_v11  ;;  %1141 = vmin.xlane.f32.xlu0 %v2609_v13  ;;  %v2617_v50 = vpop.xlane.xlu0 %925  ;;  %vm961_vm12 = vcmp.eq.f32.partialorder %v2471_v6, %v929_v62 }
 0x1a1   : > { %v2625_v36 = vcvt.s32.f32 %v1183_v35  ;;  %v977_v33 = vsel %vm961_vm12, %v2257_v30, 32  ;;  %vm960_vm0 = vcmp.eq.f32.partialorder %v2479_v38, %v2617_v50 }
 0x1a2   : > { %v2644_v0 = vsel %vm905_vm1, %v977_v33, 2147483647 }
 0x1a3   : > { %v953_v52 = vpop.xlane.xlu1 %952 }
 0x1a4   : > { %1066 = vmin.xlane.f32.xlu1 %v2619_v63  ;;  %v2623_v37 = vpop.xlane.xlu0 %949  ;;  %vm969_vm13 = vcmp.eq.f32.partialorder %v2484_v42, %v953_v52  ;;  %v1093_v52 = vshra.s32 %v2644_v0, 16 }
 0x1a5   : > { %vm968_vm2 = vcmp.eq.f32.partialorder %v2489_v32, %v2623_v37 }
 0x1a7   : > { %v1254_v20 = vpop.xlane.xlu1 %1253 }
 0x1a8   : > { %v2629_v11 = vsub.f32 %v2383_v47, %v1254_v20  ;;  %1186 = vmin.xlane.f32.xlu1 %v2625_v36  ;;  %v1251_v19 = vpop.xlane.xlu0 %1250  ;;  %v2641_v47 = vsub.f32 %v2370_v40, %v2523_v56 }
 0x1a9   : > { %v1293_v56 = vsub.f32 %v2407_v31, %v1251_v19 }
 0x1aa   : > { %v1313_v5 = vmul.f32 1.442695, %v2629_v11  ;;  %v1307_v48 = vmul.f32 1.442695, %v2641_v47 }
 0x1ab   : > { %v1260_v15 = vpop.xlane.xlu1 %1259 }
 0x1ac   : > { %1964 = vpow2.f32 %v1313_v5  ;;  %1407 = vadd.xlane.f32.xlu1 %v1406_v57  ;;  %v1257_v60 = vpop.xlane.xlu0 %1256  ;;  %v985_v57 = vsel %vm969_vm13, %v2257_v30, 32 }
 0x1ad   : > { %v2652_v40 = vsel %vm905_vm1, %v985_v57, 2147483647 }
 0x1af   : > { %v1266_v35 = vpop.xlane.xlu1 %1265 }
 0x1b0   : > { %v2636_v55 = vpop.xlane.xlu0 %1262 }
 0x1b1   : > { %v1297_v32 = vsub.f32 %v2460_v53, %v2636_v55 }
 0x1b3   : > { %v1272_v25 = vpop.xlane.xlu1 %1271 }
 0x1b4   : > { %v1300_v20 = vsub.f32 %v2367_v23, %v1272_v25  ;;  %v1269_v6 = vpop.xlane.xlu0 %1268  ;;  %v2656_v23 = vcvt.s32.f32 %v1093_v52  ;;  %v1311_v25 = vmul.f32 1.442695, %v1293_v56  ;;  %v974_v52 = vsel %vm958_vm14, %v2257_v30, 32 }
 0x1b5   : > { %v1299_v62 = vsub.f32 %v2394_v26, %v1269_v6  ;;  %v1213_v26 = vshra.s32 %v2652_v40, 16 }
 0x1b6   : > { %v1965_v5 = vpop.eup %1964  ;;  %v1325_v24 = vmul.f32 1.442695, %v1300_v20 }
 0x1b7   : > { %v1323_v42 = vmul.f32 1.442695, %v1299_v62  ;;  %v1348_v33 = vsel %vm905_vm1, %v1965_v5, 0.0  ;;  %v2660_v6 = vcvt.s32.f32 %v1213_v26  ;;  %v1295_v26 = vsub.f32 %v2423_v1, %v1257_v60  ;;  %v1278_v27 = vpop.xlane.xlu1 %1277 }
 0x1b8   : > { %1966 = vpow2.f32 %v1325_v24  ;;  %1349 = vadd.xlane.f32.xlu1 %v1348_v33  ;;  %v1296_v24 = vsub.f32 %v2420_v61, %v1260_v15  ;;  %v2673_v15 = vsel %vm905_vm1, %v974_v52, 2147483647  ;;  %v1390_v29 = vmul.f32 %v1965_v5, %v2629_v11 }
 0x1b9   : > { %1968 = vpow2.f32 %v1323_v42  ;;  %v1048_v60 = vshra.s32 %v2673_v15, 16  ;;  %v1302_v52 = vsub.f32 %v2388_v10, %v1278_v27 }
 0x1ba   : > { %1970 = vpow2.f32 %v1307_v48  ;;  %v1317_v33 = vmul.f32 1.442695, %v1296_v24 }
 0x1bb   : > { %1972 = vpow2.f32 %v1311_v25  ;;  %v982_v25 = vsel %vm966_vm15, %v2257_v30, 32  ;;  %v2689_v11 = vcvt.s32.f32 %v1048_v60 }
 0x1bc   : > { %1096 = vmin.xlane.f32.xlu1 %v2656_v23  ;;  %1974 = vpow2.f32 %v1317_v33  ;;  %v1412_v33 = vsel %vm905_vm1, %v1390_v29, 0.0 }
 0x1c0   : > { %1216 = vmin.xlane.f32.xlu1 %v2660_v6 }
 0x1c2   : > { %v1967_v19 = vpop.eup %1966 }
 0x1c3   : > { %v1969_v31 = vpop.eup %1968  ;;  %v1366_v48 = vsel %vm905_vm1, %v1967_v19, 0.0  ;;  %v1396_v22 = vmul.f32 %v1967_v19, %v1300_v20  ;;  %v2681_v20 = vsel %vm905_vm1, %v982_v25, 2147483647 }
 0x1c4   : > { %v1971_v57 = vpop.eup %1970  ;;  %1367 = vadd.xlane.f32.xlu0 %v1366_v48  ;;  %v1395_v42 = vmul.f32 %v1969_v31, %v1299_v62  ;;  %v1315_v62 = vmul.f32 1.442695, %v1295_v26  ;;  %v1363_v19 = vsel %vm905_vm1, %v1969_v31, 0.0  ;;  %v2685_v48 = vsub.f32 %v2452_v21, %v1266_v35 }
 0x1c5   : > { %v1339_v61 = vsel %vm905_vm1, %v1971_v57, 0.0  ;;  %v1430_v4 = vsel %vm905_vm1, %v1396_v22, 0.0  ;;  %v1973_v1 = vpop.eup %1972  ;;  %v1275_v22 = vpop.xlane.xlu0 %1274  ;;  %v1329_v21 = vmul.f32 1.442695, %v1302_v52  ;;  %v1387_v25 = vmul.f32 %v1971_v57, %v2641_v47 }
 0x1c6   : > { %v1427_v43 = vsel %vm905_vm1, %v1395_v42, 0.0  ;;  %1976 = vpow2.f32 %v1315_v62  ;;  %v1284_v42 = vpop.xlane.xlu1 %1283  ;;  %v1389_v5 = vmul.f32 %v1973_v1, %v1293_v56  ;;  %v2698_v10 = vsub.f32 %v2410_v54, %v1275_v22  ;;  %v1975_v31 = vpop.eup %1974 }
 0x1c7   : > { %1428 = vadd.xlane.f32.xlu1 %v1427_v43  ;;  %v1168_v43 = vshra.s32 %v2681_v20, 16  ;;  %v1304_v27 = vsub.f32 %v2434_v9, %v1284_v42  ;;  %v976_v62 = vsel %vm960_vm0, %v2257_v30, 32  ;;  %v1354_v38 = vsel %vm905_vm1, %v1975_v31, 0.0 }
 0x1c8   : > { %1340 = vadd.xlane.f32.xlu0 %v1339_v61  ;;  %v1321_v61 = vmul.f32 1.442695, %v2685_v48  ;;  %v1409_v35 = vsel %vm905_vm1, %v1389_v5, 0.0  ;;  %v1327_v54 = vmul.f32 1.442695, %v2698_v10  ;;  %v1392_v50 = vmul.f32 %v1975_v31, %v1296_v24 }
 0x1c9   : > { %v2701_v56 = vcvt.s32.f32 %v1168_v43  ;;  %v1333_v9 = vmul.f32 1.442695, %v1304_v27  ;;  %v2711_v29 = vsel %vm905_vm1, %v976_v62, 2147483647  ;;  %v1403_v47 = vsel %vm905_vm1, %v1387_v25, 0.0 }
 0x1ca   : > { %1978 = vpow2.f32 %v1321_v61  ;;  %v984_v57 = vsel %vm968_vm2, %v2257_v30, 32  ;;  %v1290_v37 = vpop.xlane.xlu1 %1289  ;;  %v1418_v60 = vsel %vm905_vm1, %v1392_v50, 0.0  ;;  %v1078_v24 = vshra.s32 %v2711_v29, 16 }
 0x1cb   : > { %1431 = vadd.xlane.f32.xlu1 %v1430_v4  ;;  %1980 = vpow2.f32 %v1329_v21  ;;  %v2720_v42 = vsel %vm905_vm1, %v984_v57, 2147483647  ;;  %v1319_v5 = vmul.f32 1.442695, %v1297_v32  ;;  %v1306_v43 = vsub.f32 %v2468_v16, %v1290_v37  ;;  %v1281_v21 = vpop.xlane.xlu0 %1280 }
 0x1cc   : > { %1364 = vadd.xlane.f32.xlu0 %v1363_v19  ;;  %1982 = vpow2.f32 %v1333_v9  ;;  %v2725_v55 = vcvt.s32.f32 %v1078_v24  ;;  %v1198_v61 = vshra.s32 %v2720_v42, 16 }
 0x1cd   : > { %1984 = vpow2.f32 %v1327_v54 }
 0x1ce   : > { %1986 = vpow2.f32 %v1319_v5  ;;  %v2731_v25 = vcvt.s32.f32 %v1198_v61 }
 0x1cf   : > { %1413 = vadd.xlane.f32.xlu1 %v1412_v33  ;;  %v1345_v33 = vsel %vm905_vm1, %v1973_v1, 0.0  ;;  %v1303_v1 = vsub.f32 %v2440_v41, %v1281_v21 }
 0x1d0   : > { %1051 = vmin.xlane.f32.xlu0 %v2689_v11  ;;  %v1977_v4 = vpop.eup %1976 }
 0x1d1   : > { %v1391_v19 = vmul.f32 %v1977_v4, %v1295_v26  ;;  %v1331_v54 = vmul.f32 1.442695, %v1303_v1 }
 0x1d3   : > { %1410 = vadd.xlane.f32.xlu1 %v1409_v35  ;;  %v1415_v53 = vsel %vm905_vm1, %v1391_v19, 0.0  ;;  %v1337_v35 = vmul.f32 1.442695, %v1306_v43 }
 0x1d4   : > { %1171 = vmin.xlane.f32.xlu0 %v2701_v56  ;;  %v1979_v22 = vpop.eup %1978 }
 0x1d5   : > { %v1981_v26 = vpop.eup %1980  ;;  %v1360_v31 = vsel %vm905_vm1, %v1979_v22, 0.0  ;;  %1988 = vpow2.f32 %v1337_v35  ;;  %v1394_v57 = vmul.f32 %v1979_v22, %v2685_v48  ;;  %v1351_v48 = vsel %vm905_vm1, %v1977_v4, 0.0 }
 0x1d6   : > { %v1398_v16 = vmul.f32 %v1981_v26, %v1302_v52  ;;  %v1983_v62 = vpop.eup %1982  ;;  %1990 = vpow2.f32 %v1331_v54  ;;  %v1372_v37 = vsel %vm905_vm1, %v1981_v26, 0.0 }
 0x1d7   : > { %1355 = vadd.xlane.f32.xlu1 %v1354_v38  ;;  %v1985_v9 = vpop.eup %1984  ;;  %v1400_v50 = vmul.f32 %v1983_v62, %v1304_v27  ;;  %v1378_v27 = vsel %vm905_vm1, %v1983_v62, 0.0 }
 0x1d8   : > { %1404 = vadd.xlane.f32.xlu0 %v1403_v47  ;;  %v1436_v38 = vsel %vm905_vm1, %v1398_v16, 0.0  ;;  %v1369_v47 = vsel %vm905_vm1, %v1985_v9, 0.0  ;;  %v1987_v52 = vpop.eup %1986 }
 0x1d9   : > { %v1442_v41 = vsel %vm905_vm1, %v1400_v50, 0.0  ;;  %v1393_v19 = vmul.f32 %v1987_v52, %v1297_v32 }
 0x1db   : > { %1419 = vadd.xlane.f32.xlu1 %v1418_v60  ;;  %v1424_v60 = vsel %vm905_vm1, %v1394_v57, 0.0 }
 0x1dc   : > { %1346 = vadd.xlane.f32.xlu0 %v1345_v33  ;;  %v1421_v33 = vsel %vm905_vm1, %v1393_v19, 0.0 }
 0x1df   : > { %1416 = vadd.xlane.f32.xlu1 %v1415_v53  ;;  %v1989_v24 = vpop.eup %1988  ;;  %v1287_v53 = vpop.xlane.xlu0 %1286 }
 0x1e0   : > { %1081 = vmin.xlane.f32.xlu0 %v2725_v55  ;;  %v1402_v5 = vmul.f32 %v1989_v24, %v1306_v43  ;;  %v1991_v22 = vpop.eup %1990  ;;  %v1305_v61 = vsub.f32 %v2476_v34, %v1287_v53  ;;  %v1384_v35 = vsel %vm905_vm1, %v1989_v24, 0.0  ;;  %v1357_v43 = vsel %vm905_vm1, %v1987_v52, 0.0 }
 0x1e1   : > { %v1375_v32 = vsel %vm905_vm1, %v1991_v22, 0.0  ;;  %v1399_v16 = vmul.f32 %v1991_v22, %v1303_v1  ;;  %v987_v1 = vand.u32 65535, %v2551_v17  ;;  %v1107_v24 = vand.u32 65535, %v2568_v49 }
 0x1e2   : > { %v1448_v26 = vsel %vm905_vm1, %v1402_v5, 0.0  ;;  %v1335_v21 = vmul.f32 1.442695, %v1305_v61  ;;  %v1017_v49 = vand.u32 65535, %v2579_v59 }
 0x1e3   : > { %1361 = vadd.xlane.f32.xlu1 %v1360_v31  ;;  %v1397_v31 = vmul.f32 %v1985_v9, %v2698_v10  ;;  %v1439_v34 = vsel %vm905_vm1, %v1399_v16, 0.0  ;;  %v1122_v9 = vand.u32 65535, %v2533_v18  ;;  %v989_v19 = vcvt.s32.f32 %v987_v1 }
 0x1e4   : > { %1201 = vmin.xlane.f32.xlu0 %v2731_v25  ;;  %1992 = vpow2.f32 %v1335_v21  ;;  %v1109_v5 = vcvt.s32.f32 %v1107_v24  ;;  %v1062_v21 = vand.u32 65535, %v2601_v28 }
 0x1e5   : > { %v1433_v4 = vsel %vm905_vm1, %v1397_v31, 0.0 }
 0x1e7   : > { %1437 = vadd.xlane.f32.xlu1 %v1436_v38 }
 0x1e8   : > { %1370 = vadd.xlane.f32.xlu0 %v1369_v47  ;;  %v1002_v47 = vand.u32 65535, %v2536_v51  ;;  %v1032_v51 = vand.u32 65535, %v2544_v2  ;;  %v1152_v2 = vand.u32 65535, %v2565_v39  ;;  %v1137_v39 = vand.u32 65535, %v2586_v14 }
 0x1ea   : > { %v1004_v10 = vcvt.s32.f32 %v1002_v47  ;;  %v1154_v22 = vcvt.s32.f32 %v1152_v2 }
 0x1eb   : > { %1443 = vadd.xlane.f32.xlu1 %v1442_v41 }
 0x1ec   : > { %1373 = vadd.xlane.f32.xlu0 %v1372_v37 }
 0x1ee   : > { %v1993_v62 = vpop.eup %1992 }
 0x1ef   : > { %1425 = vadd.xlane.f32.xlu1 %v1424_v60  ;;  %v1381_v54 = vsel %vm905_vm1, %v1993_v62, 0.0  ;;  %v1401_v38 = vmul.f32 %v1993_v62, %v1305_v61  ;;  %v1124_v60 = vcvt.s32.f32 %v1122_v9  ;;  %v1019_v61 = vcvt.s32.f32 %v1017_v49 }
 0x1f0   : > { %1379 = vadd.xlane.f32.xlu0 %v1378_v27  ;;  %v1212_v9 = vand.u32 65535, %v2652_v40  ;;  %v1047_v40 = vand.u32 65535, %v2673_v15 }
 0x1f1   : > { %v1445_v50 = vsel %vm905_vm1, %v1401_v38, 0.0 }
 0x1f3   : > { %1422 = vadd.xlane.f32.xlu1 %v1421_v33  ;;  %v1034_v33 = vcvt.s32.f32 %v1032_v51 }
 0x1f4   : > { %1352 = vadd.xlane.f32.xlu0 %v1351_v48 }
 0x1f7   : > { %1449 = vadd.xlane.f32.xlu1 %v1448_v26 }
 0x1f8   : > { %1376 = vadd.xlane.f32.xlu0 %v1375_v32  ;;  %v1139_v32 = vcvt.s32.f32 %v1137_v39 }
 0x1fc   : > { %1385 = vadd.xlane.f32.xlu0 %v1384_v35  ;;  %v1182_v35 = vand.u32 65535, %v2613_v8 }
 0x1fe   : > { %v1184_v28 = vcvt.s32.f32 %v1182_v35 }
 0x200   : > { %1358 = vadd.xlane.f32.xlu0 %v1357_v43 }
 0x204   : > { %1434 = vadd.xlane.f32.xlu0 %v1433_v4 }
 0x208   : > { %1440 = vadd.xlane.f32.xlu0 %v1439_v34 }
 0x20c   : > { %1382 = vadd.xlane.f32.xlu0 %v1381_v54 }
 0x210   : > { %1446 = vadd.xlane.f32.xlu0 %v1445_v50 }
 0x21d   : > { %v2754_v41 = vpop.xlane.xlu1 %1006 }
 0x21e   : > { %vm1008_vm3 = vcmp.eq.f32.partialorder %v2547_v7, %v2754_v41 }
 0x21f   : > { %v1009_v57 = vsel %vm1008_vm3, %v1004_v10, inf }
 0x220   : > { %1010 = vmin.xlane.f32.xlu1 %v1009_v57  ;;  %v1214_v57 = vcvt.s32.f32 %v1212_v9 }
 0x221   : > { %v2760_v52 = vpop.xlane.xlu1 %1126  ;;  %v2762_v37 = vpop.xlane.xlu0 %991 }
 0x222   : > { %vm1128_vm1 = vcmp.eq.f32.partialorder %v2560_v58, %v2760_v52  ;;  %vm993_vm4 = vcmp.eq.f32.partialorder %v2562_v3, %v2762_v37 }
 0x223   : > { %v1129_v18 = vsel %vm1128_vm1, %v1124_v60, inf  ;;  %v994_v7 = vsel %vm993_vm4, %v989_v19, inf }
 0x224   : > { %1130 = vmin.xlane.f32.xlu1 %v1129_v18  ;;  %995 = vmin.xlane.f32.xlu0 %v994_v7  ;;  %v1049_v18 = vcvt.s32.f32 %v1047_v40  ;;  %v1167_v7 = vand.u32 65535, %v2681_v20 }
 0x225   : > { %v2770_v17 = vpop.xlane.xlu1 %1036  ;;  %v2772_v27 = vpop.xlane.xlu0 %1111 }
 0x226   : > { %vm1038_vm5 = vcmp.eq.f32.partialorder %v2576_v46, %v2770_v17  ;;  %vm1113_vm6 = vcmp.eq.f32.partialorder %v2582_v12, %v2772_v27  ;;  %v1169_v2 = vcvt.s32.f32 %v1167_v7 }
 0x227   : > { %v1039_v58 = vsel %vm1038_vm5, %v1034_v33, inf  ;;  %v1114_v3 = vsel %vm1113_vm6, %v1109_v5, inf }
 0x228   : > { %1040 = vmin.xlane.f32.xlu1 %v1039_v58  ;;  %1115 = vmin.xlane.f32.xlu0 %v1114_v3 }
 0x229   : > { %v2780_v53 = vpop.xlane.xlu1 %1156  ;;  %v2782_v48 = vpop.xlane.xlu0 %1021 }
 0x22a   : > { %vm1158_vm7 = vcmp.eq.f32.partialorder %v2597_v45, %v2780_v53  ;;  %vm1023_vm8 = vcmp.eq.f32.partialorder %v2595_v44, %v2782_v48  ;;  %v1064_v44 = vcvt.s32.f32 %v1062_v21 }
 0x22b   : > { %v1159_v46 = vsel %vm1158_vm7, %v1154_v22, inf  ;;  %v1024_v59 = vsel %vm1023_vm8, %v1019_v61, inf }
 0x22c   : > { %1160 = vmin.xlane.f32.xlu1 %v1159_v46  ;;  %1025 = vmin.xlane.f32.xlu0 %v1024_v59  ;;  %v1197_v46 = vand.u32 65535, %v2720_v42 }
 0x22d   : > { %v1344_v12 = vpop.xlane.xlu1 %1343  ;;  %v2789_v26 = vpop.xlane.xlu0 %1141 }
 0x22e   : > { %1994 = vrcp.f32 %v1344_v12  ;;  %vm1143_vm9 = vcmp.eq.f32.partialorder %v2609_v13, %v2789_v26 }
 0x22f   : > { %1996 = vlog2.f32 %v1344_v12  ;;  %v1144_v14 = vsel %vm1143_vm9, %v1139_v32, inf }
 0x230   : > { %1145 = vmin.xlane.f32.xlu0 %v1144_v14 }
 0x231   : > { %v2794_v45 = vpop.xlane.xlu1 %1066 }
 0x232   : > { %vm1068_vm10 = vcmp.eq.f32.partialorder %v2619_v63, %v2794_v45  ;;  %v1092_v63 = vand.u32 65535, %v2644_v0 }
 0x233   : > { %v1069_v43 = vsel %vm1068_vm10, %v1064_v44, inf  ;;  %v1199_v44 = vcvt.s32.f32 %v1197_v46 }
 0x234   : > { %1070 = vmin.xlane.f32.xlu1 %v1069_v43  ;;  %v1094_v10 = vcvt.s32.f32 %v1092_v63 }
 0x235   : > { %v2799_v31 = vpop.xlane.xlu1 %1186 }
 0x236   : > { %vm1188_vm11 = vcmp.eq.f32.partialorder %v2625_v36, %v2799_v31 }
 0x237   : > { %v1189_v13 = vsel %vm1188_vm11, %v1184_v28, inf }
 0x238   : > { %v1995_v4 = vpop.eup %1994  ;;  %1190 = vmin.xlane.f32.xlu1 %v1189_v13 }
 0x239   : > { %v1997_v16 = vpop.eup %1996  ;;  %v1408_v34 = vpop.xlane.xlu1 %1407 }
 0x23a   : > { %v1486_v62 = vmul.f32 0.6931472, %v1997_v16  ;;  %v1454_v54 = vmul.f32 %v1995_v4, %v1408_v34  ;;  %v3057_v16 = vld [vmem:[#allocation10_spill] sm:$0xff] }
 0x23b   : > { %vm1547_vm3 = vcmp.lt.s32.totalorder %v3057_v16, 288 }
 0x23c   : > { %v1516_v38 = vsub.f32 3.465736, %v1486_v62 }
 0x23e   : > { %v2803_v8 = vadd.f32 %v1516_v38, %v1454_v54  ;;  %v3058_v38 = vld [vmem:[#allocation8_spill] sm:$0xff] }
 0x23f   : > { %vm1548_vm1 = vcmp.lt.s32.totalorder %v3058_v38, 288 }
 0x245   : > { %v1350_v50 = vpop.xlane.xlu1 %1349 }
 0x249   : > { %v2806_v47 = vpop.xlane.xlu1 %1096 }
 0x24a   : > { %vm1098_vm12 = vcmp.eq.f32.partialorder %v2656_v23, %v2806_v47 }
 0x24b   : > { %v1099_v36 = vsel %vm1098_vm12, %v1094_v10, inf }
 0x24c   : > { %1100 = vmin.xlane.f32.xlu1 %v1099_v36  ;;  %v3059_v36 = vld [vmem:[#allocation14_spill] sm:$0xff] }
 0x24d   : > { %v2811_v1 = vpop.xlane.xlu1 %1216  ;;  %vm1549_vm4 = vcmp.lt.s32.totalorder %v3059_v36, 288 }
 0x24e   : > { %vm1218_vm13 = vcmp.eq.f32.partialorder %v2660_v6, %v2811_v1 }
 0x24f   : > { %v1219_v60 = vsel %vm1218_vm13, %v1214_v57, inf }
 0x250   : > { %1220 = vmin.xlane.f32.xlu1 %v1219_v60  ;;  %v1564_v60 = vsel %vm1548_vm1, %v2803_v8, 0.0 }
 0x251   : > { %v2815_v19 = vpop.xlane.xlu0 %1367 }
 0x254   : > { %v2817_v51 = vpop.xlane.xlu1 %1428 }
 0x255   : > { %v1341_v0 = vpop.xlane.xlu0 %1340 }
 0x256   : > { %1998 = vlog2.f32 %v1341_v0 }
 0x257   : > { %2000 = vrcp.f32 %v1341_v0 }
 0x258   : > { %v2827_v6 = vpop.xlane.xlu1 %1431  ;;  %2002 = vlog2.f32 %v1350_v50 }
 0x259   : > { %v2819_v24 = vpop.xlane.xlu0 %1364  ;;  %2004 = vrcp.f32 %v1350_v50 }
 0x25c   : > { %v1414_v49 = vpop.xlane.xlu1 %1413 }
 0x25d   : > { %v2822_v23 = vpop.xlane.xlu0 %1051 }
 0x25e   : > { %vm1053_vm14 = vcmp.eq.f32.partialorder %v2689_v11, %v2822_v23  ;;  %v1077_v11 = vand.u32 65535, %v2711_v29 }
 0x25f   : > { %v1054_v33 = vsel %vm1053_vm14, %v1049_v18, inf  ;;  %v3060_v18 = vld [vmem:[#allocation11_spill] sm:$0xff] }
 0x260   : > { %1055 = vmin.xlane.f32.xlu0 %v1054_v33  ;;  %v1999_v3 = vpop.eup %1998  ;;  %v1411_v22 = vpop.xlane.xlu1 %1410  ;;  %v1079_v39 = vcvt.s32.f32 %v1077_v11  ;;  %vm1550_vm5 = vcmp.lt.s32.totalorder %v3060_v18, 288 }
 0x261   : > { %v2829_v5 = vpop.xlane.xlu0 %1171  ;;  %v2001_v59 = vpop.eup %2000 }
 0x262   : > { %vm1173_vm15 = vcmp.eq.f32.partialorder %v2701_v56, %v2829_v5  ;;  %v1484_v56 = vmul.f32 0.6931472, %v1999_v3  ;;  %v2003_v21 = vpop.eup %2002 }
 0x263   : > { %v1174_v15 = vsel %vm1173_vm15, %v1169_v2, inf  ;;  %v2005_v43 = vpop.eup %2004  ;;  %v1490_v13 = vmul.f32 0.6931472, %v2003_v21 }
 0x264   : > { %1175 = vmin.xlane.f32.xlu0 %v1174_v15  ;;  %v1356_v14 = vpop.xlane.xlu1 %1355  ;;  %v1515_v35 = vsub.f32 3.465736, %v1484_v56  ;;  %v1458_v62 = vmul.f32 %v2005_v43, %v1414_v49 }
 0x265   : > { %v1405_v58 = vpop.xlane.xlu0 %1404  ;;  %v1518_v63 = vsub.f32 3.465736, %v1490_v13 }
 0x266   : > { %v1452_v32 = vmul.f32 %v2001_v59, %v1405_v58 }
 0x267   : > { %v1534_v0 = vadd.f32 %v1518_v63, %v1458_v62  ;;  %v3061_v62 = vld [vmem:[#allocation17_spill] sm:$0xff] }
 0x268   : > { %v1531_v4 = vadd.f32 %v1515_v35, %v1452_v32  ;;  %v2845_v50 = vpop.xlane.xlu1 %1419  ;;  %vm1551_vm6 = vcmp.lt.s32.totalorder %v3061_v62, 288 }
 0x269   : > { %v1347_v20 = vpop.xlane.xlu0 %1346  ;;  %v1566_v58 = vsel %vm1550_vm5, %v1534_v0, 0.0 }
 0x26a   : > { %2006 = vrcp.f32 %v1347_v20  ;;  %v1563_v10 = vsel %vm1547_vm3, %v1531_v4, 0.0  ;;  %vm1226_vm3 = vcmask 7168  }
 0x26b   : > { %2008 = vlog2.f32 %v1347_v20  ;;  %v1579_v7 = vadd.f32 %v1564_v60, %v1563_v10 }
 0x26c   : > { %v1417_v15 = vpop.xlane.xlu1 %1416 }
 0x26d   : > { %v2834_v61 = vpop.xlane.xlu0 %1081 }
 0x26e   : > { %vm1083_vm0 = vcmp.eq.f32.partialorder %v2725_v55, %v2834_v61 }
 0x26f   : > { %v1084_v12 = vsel %vm1083_vm0, %v1079_v39, inf }
 0x270   : > { %1085 = vmin.xlane.f32.xlu0 %v1084_v12  ;;  %v1362_v3 = vpop.xlane.xlu1 %1361 }
 0x271   : > { %v2839_v29 = vpop.xlane.xlu0 %1201 }
 0x272   : > { %vm1203_vm2 = vcmp.eq.f32.partialorder %v2731_v25, %v2839_v29 }
 0x273   : > { %v1204_v28 = vsel %vm1203_vm2, %v1199_v44, inf }
 0x274   : > { %v2007_v42 = vpop.eup %2006  ;;  %1205 = vmin.xlane.f32.xlu0 %v1204_v28  ;;  %v2853_v8 = vpop.xlane.xlu1 %1437 }
 0x275   : > { %v2009_v55 = vpop.eup %2008  ;;  %v1371_v34 = vpop.xlane.xlu0 %1370  ;;  %v1456_v9 = vmul.f32 %v2007_v42, %v1411_v22 }
 0x276   : > { %v1488_v54 = vmul.f32 0.6931472, %v2009_v55 }
 0x278   : > { %v1517_v25 = vsub.f32 3.465736, %v1488_v54  ;;  %v2859_v21 = vpop.xlane.xlu1 %1443 }
 0x279   : > { %v1374_v57 = vpop.xlane.xlu0 %1373 }
 0x27a   : > { %v1533_v40 = vadd.f32 %v1517_v25, %v1456_v9 }
 0x27c   : > { %v1565_v33 = vsel %vm1549_vm4, %v1533_v40, 0.0  ;;  %v1426_v16 = vpop.xlane.xlu1 %1425  ;;  %vm1601_vm4 = vcmp.eq.s32.totalorder %v2257_v30, 0 }
 0x27d   : > { %v1580_v2 = vadd.f32 %v1579_v7, %v1565_v33  ;;  %v1380_v49 = vpop.xlane.xlu0 %1379 }
 0x27f   : > { %v2850_v20 = vadd.f32 %v1580_v2, %v1566_v58  ;;  %v3062_v58 = vld [vmem:[#allocation16_spill] sm:$0xff] }
 0x280   : > { %vm1552_vm7 = vcmp.lt.s32.totalorder %v3062_v58, 288 }
 0x281   : > { %v1353_v11 = vpop.xlane.xlu0 %1352 }
 0x282   : > { %2010 = vlog2.f32 %v1353_v11 }
 0x283   : > { %2012 = vlog2.f32 %v1356_v14 }
 0x284   : > { %2014 = vrcp.f32 %v1353_v11  ;;  %v1423_v11 = vpop.xlane.xlu1 %1422 }
 0x285   : > { %v1377_v22 = vpop.xlane.xlu0 %1376  ;;  %2016 = vlog2.f32 %v1362_v3 }
 0x286   : > { %2018 = vlog2.f32 %v2815_v19 }
 0x287   : > { %2020 = vlog2.f32 %v2819_v24 }
 0x288   : > { %2022 = vrcp.f32 %v1356_v14 }
 0x289   : > { %v2855_v39 = vpop.xlane.xlu0 %1385  ;;  %2024 = vrcp.f32 %v1362_v3 }
 0x28a   : > { %2026 = vrcp.f32 %v2819_v24 }
 0x28c   : > { %v2011_v46 = vpop.eup %2010 }
 0x28d   : > { %v1359_v56 = vpop.xlane.xlu0 %1358  ;;  %v2013_v59 = vpop.eup %2012  ;;  %v1492_v12 = vmul.f32 0.6931472, %v2011_v46  ;;  %v3064_v46 = vld [vmem:[#allocation21_spill] sm:$0xff] }
 0x28e   : > { %2028 = vrcp.f32 %v1359_v56  ;;  %v2015_v32 = vpop.eup %2014  ;;  %v1494_v14 = vmul.f32 0.6931472, %v2013_v59  ;;  %vm1553_vm9 = vcmp.lt.s32.totalorder %v3064_v46, 288 }
 0x28f   : > { %2030 = vlog2.f32 %v1359_v56  ;;  %v1519_v44 = vsub.f32 3.465736, %v1492_v12  ;;  %v2017_v43 = vpop.eup %2016  ;;  %v1460_v28 = vmul.f32 %v2015_v32, %v1417_v15 }
 0x290   : > { %2032 = vlog2.f32 %v1371_v34  ;;  %v2019_v42 = vpop.eup %2018  ;;  %v1498_v55 = vmul.f32 0.6931472, %v2017_v43  ;;  %v1520_v63 = vsub.f32 3.465736, %v1494_v14 }
 0x291   : > { %2034 = vlog2.f32 %v1374_v57  ;;  %v2861_v35 = vpop.xlane.xlu0 %1434  ;;  %v2021_v24 = vpop.eup %2020  ;;  %v1535_v13 = vadd.f32 %v1519_v44, %v1460_v28  ;;  %v1502_v60 = vmul.f32 0.6931472, %v2019_v42 }
 0x292   : > { %2036 = vrcp.f32 %v2815_v19  ;;  %v2023_v4 = vpop.eup %2022  ;;  %v1500_v9 = vmul.f32 0.6931472, %v2021_v24  ;;  %v1522_v0 = vsub.f32 3.465736, %v1498_v55 }
 0x293   : > { %2038 = vrcp.f32 %v1371_v34  ;;  %v2025_v38 = vpop.eup %2024  ;;  %v1462_v25 = vmul.f32 %v2023_v4, %v2845_v50  ;;  %v1567_v34 = vsel %vm1551_vm6, %v1535_v13, 0.0  ;;  %v1524_v32 = vsub.f32 3.465736, %v1502_v60  ;;  %v3065_v13 = vld [vmem:[#allocation9_spill] sm:$0xff] }
 0x294   : > { %2040 = vlog2.f32 %v1380_v49  ;;  %v2027_v10 = vpop.eup %2026  ;;  %v1466_v40 = vmul.f32 %v2025_v38, %v1426_v16  ;;  %v1582_v50 = vadd.f32 %v2850_v20, %v1567_v34  ;;  %vm1556_vm10 = vcmp.lt.s32.totalorder %v3065_v13, 288  ;;  %v3066_v16 = vld [vmem:[#allocation13_spill] sm:$0xff] }
 0x295   : > { %2042 = vlog2.f32 %v1377_v22  ;;  %v2865_v54 = vpop.xlane.xlu0 %1440  ;;  %v1536_v33 = vadd.f32 %v1520_v63, %v1462_v25  ;;  %vm1555_vm11 = vcmp.lt.s32.totalorder %v3066_v16, 288 }
 0x296   : > { %2044 = vrcp.f32 %v1374_v57  ;;  %v3063_v57 = vld [vmem:[#allocation20_spill] sm:$0xff]  ;;  %v1538_v44 = vadd.f32 %v1522_v0, %v1466_v40 }
 0x297   : > { %2046 = vrcp.f32 %v1377_v22  ;;  %vm1554_vm8 = vcmp.lt.s32.totalorder %v3063_v57, 288  ;;  %v1523_v22 = vsub.f32 3.465736, %v1500_v9  ;;  %v1568_v14 = vsel %vm1552_vm7, %v1536_v33, 0.0  ;;  %v3067_v57 = vld [vmem:[#allocation15_spill] sm:$0xff] }
 0x298   : > { %v2029_v19 = vpop.eup %2028  ;;  %2048 = vlog2.f32 %v2855_v39  ;;  %v1583_v55 = vadd.f32 %v1582_v50, %v1568_v14  ;;  %vm1557_vm12 = vcmp.lt.s32.totalorder %v3067_v57, 288  ;;  %v1450_v14 = vpop.xlane.xlu1 %1449 }
 0x299   : > { %v2031_v36 = vpop.eup %2030  ;;  %v1383_v18 = vpop.xlane.xlu0 %1382  ;;  %2050 = vrcp.f32 %v1380_v49  ;;  %v1464_v56 = vmul.f32 %v2029_v19, %v1423_v11  ;;  %v1468_v49 = vmul.f32 %v2027_v10, %v2817_v51  ;;  %v1570_v19 = vsel %vm1554_vm8, %v1538_v44, 0.0 }
 0x29a   : > { %v2033_v7 = vpop.eup %2032  ;;  %v1496_v2 = vmul.f32 0.6931472, %v2031_v36  ;;  %2052 = vlog2.f32 %v1383_v18 }
 0x29b   : > { %v2035_v15 = vpop.eup %2034  ;;  %2054 = vrcp.f32 %v1383_v18  ;;  %v1504_v28 = vmul.f32 0.6931472, %v2033_v7  ;;  %v1539_v51 = vadd.f32 %v1523_v22, %v1468_v49 }
 0x29c   : > { %v2037_v3 = vpop.eup %2036  ;;  %v1521_v59 = vsub.f32 3.465736, %v1496_v2  ;;  %v1506_v42 = vmul.f32 0.6931472, %v2035_v15  ;;  %2056 = vrcp.f32 %v2855_v39 }
 0x29d   : > { %v2039_v12 = vpop.eup %2038  ;;  %v1470_v4 = vmul.f32 %v2037_v3, %v2827_v6  ;;  %v1525_v39 = vsub.f32 3.465736, %v1504_v28  ;;  %v1571_v18 = vsel %vm1555_vm11, %v1539_v51, 0.0  ;;  %v3070_v51 = vld [vmem:[#allocation18_spill] sm:$0xff] }
 0x29e   : > { %v2041_v43 = vpop.eup %2040  ;;  %v1537_v20 = vadd.f32 %v1521_v59, %v1464_v56  ;;  %v1472_v38 = vmul.f32 %v2039_v12, %v2861_v35  ;;  %v1526_v6 = vsub.f32 3.465736, %v1506_v42  ;;  %v3068_v12 = vld [vmem:[#allocation12_spill] sm:$0xff]  ;;  %v3069_v42 = vld [vmem:[#allocation19_spill] sm:$0xff]  ;;  %vm1560_vm15 = vcmp.lt.s32.totalorder %v3070_v51, 288 }
 0x29f   : > { %v2043_v24 = vpop.eup %2042  ;;  %v1540_v10 = vadd.f32 %v1524_v32, %v1470_v4  ;;  %v1510_v9 = vmul.f32 0.6931472, %v2041_v43  ;;  %vm1558_vm13 = vcmp.lt.s32.totalorder %v3068_v12, 288  ;;  %v1013_v43 = vcvt.f32.s32 %v2754_v41 }
 0x2a0   : > { %v1569_v62 = vsel %vm1553_vm9, %v1537_v20, 0.0  ;;  %v2045_v63 = vpop.eup %2044  ;;  %v1508_v36 = vmul.f32 0.6931472, %v2043_v24  ;;  %v1541_v35 = vadd.f32 %v1525_v39, %v1472_v38  ;;  %vm1559_vm14 = vcmp.lt.s32.totalorder %v3069_v42, 288  ;;  %v1447_v20 = vpop.xlane.xlu0 %1446  ;;  %v3072_v39 = vld [vmem:[#allocation22_spill] sm:$0xff] }
 0x2a1   : > { %v1584_v25 = vadd.f32 %v1583_v55, %v1569_v62  ;;  %v2047_v34 = vpop.eup %2046  ;;  %v1474_v7 = vmul.f32 %v2045_v63, %v2853_v8  ;;  %v1572_v15 = vsel %vm1556_vm10, %v1540_v10, 0.0  ;;  %v1528_v58 = vsub.f32 3.465736, %v1510_v9 }
 0x2a2   : > { %v2049_v60 = vpop.eup %2048  ;;  %v1476_v33 = vmul.f32 %v2047_v34, %v2865_v54  ;;  %v1527_v22 = vsub.f32 3.465736, %v1508_v36  ;;  %v1573_v32 = vsel %vm1557_vm12, %v1541_v35, 0.0  ;;  %v1133_v63 = vcvt.f32.s32 %v2760_v52 }
 0x2a3   : > { %v1585_v0 = vadd.f32 %v1584_v25, %v1570_v19  ;;  %v2051_v40 = vpop.eup %2050  ;;  %v1542_v50 = vadd.f32 %v1526_v6, %v1474_v7  ;;  %v1514_v3 = vmul.f32 0.6931472, %v2049_v60  ;;  %v998_v41 = vcvt.f32.s32 %v2762_v37  ;;  %v3071_v19 = vld [vmem:[#allocation23_spill] sm:$0xff] }
 0x2a4   : > { %v2053_v2 = vpop.eup %2052  ;;  %v1478_v8 = vmul.f32 %v2051_v40, %v2859_v21  ;;  %v1543_v54 = vadd.f32 %v1527_v22, %v1476_v33  ;;  %vm1561_vm0 = vcmp.lt.s32.totalorder %v3071_v19, 288  ;;  %v1014_v25 = vshll.u32 %v1013_v43, 16 }
 0x2a5   : > { %v1586_v11 = vadd.f32 %v1585_v0, %v1571_v18  ;;  %v1512_v46 = vmul.f32 0.6931472, %v2053_v2  ;;  %v2055_v56 = vpop.eup %2054  ;;  %v1530_v13 = vsub.f32 3.465736, %v1514_v3  ;;  %v1574_v4 = vsel %vm1558_vm13, %v1542_v50, 0.0 }
 0x2a6   : > { %v2057_v44 = vpop.eup %2056  ;;  %v1544_v24 = vadd.f32 %v1528_v58, %v1478_v8  ;;  %v1480_v55 = vmul.f32 %v2055_v56, %v1447_v20  ;;  %v1575_v62 = vsel %vm1559_vm14, %v1543_v54, 0.0  ;;  %vm1562_vm2 = vcmp.lt.s32.totalorder %v3072_v39, 288 }
 0x2a7   : > { %v1587_v59 = vadd.f32 %v1586_v11, %v1572_v15  ;;  %v1529_v49 = vsub.f32 3.465736, %v1512_v46  ;;  %v1482_v21 = vmul.f32 %v2057_v44, %v1450_v14  ;;  %v1134_v0 = vshll.u32 %v1133_v63, 16 }
 0x2a8   : > { %v1576_v6 = vsel %vm1560_vm15, %v1544_v24, 0.0  ;;  %v999_v40 = vshll.u32 %v998_v41, 16  ;;  %v1043_v18 = vcvt.f32.s32 %v2770_v17  ;;  %v1118_v2 = vcvt.f32.s32 %v2772_v27 }
 0x2a9   : > { %v1588_v28 = vadd.f32 %v1587_v59, %v1573_v32  ;;  %v1545_v38 = vadd.f32 %v1529_v49, %v1480_v55  ;;  %v1546_v34 = vadd.f32 %v1530_v13, %v1482_v21  ;;  %v1163_v46 = vcvt.f32.s32 %v2780_v53 }
 0x2aa   : > { %v1044_v22 = vshll.u32 %v1043_v18, 16  ;;  %v1119_v12 = vshll.u32 %v1118_v2, 16  ;;  %v1028_v27 = vcvt.f32.s32 %v2782_v48  ;;  %v1148_v42 = vcvt.f32.s32 %v2789_v26 }
 0x2ab   : > { %v1589_v16 = vadd.f32 %v1588_v28, %v1574_v4  ;;  %v1577_v37 = vsel %vm1561_vm0, %v1545_v38, 0.0  ;;  %v1578_v15 = vsel %vm1562_vm2, %v1546_v34, 0.0  ;;  %v1164_v53 = vshll.u32 %v1163_v46, 16  ;;  %v3073_v4 = vld [vmem:[#allocation7_spill] sm:$0xff] }
 0x2ac   : > { %v1029_v28 = vshll.u32 %v1028_v27, 16  ;;  %vm1600_vm1 = vcmp.eq.s32.totalorder %v3073_v4, 0  ;;  %v1149_v26 = vshll.u32 %v1148_v42, 16  ;;  %v1193_v19 = vcvt.f32.s32 %v2799_v31 }
 0x2ad   : > { %v1590_v10 = vadd.f32 %v1589_v16, %v1575_v62  ;;  %v1011_v9 = vpop.xlane.xlu1 %1010  ;;  %v1073_v62 = vcvt.f32.s32 %v2794_v45  ;;  %vm1602_vm5 = vmand %vm1600_vm1, %vm1601_vm4 }
 0x2ae   : > { %v1012_v36 = vcvt.f32.s32 %v1011_v9 }
 0x2af   : > { %v1591_v52 = vadd.f32 %v1590_v10, %v1576_v6  ;;  %v1074_v10 = vshll.u32 %v1073_v62, 16 }
 0x2b0   : > { %v1015_v60 = vadd.s32 %v1014_v25, %v1012_v36 }
 0x2b1   : > { %v1592_v7 = vadd.f32 %v1591_v52, %v1577_v37  ;;  %v1131_v35 = vpop.xlane.xlu1 %1130  ;;  %v996_v33 = vpop.xlane.xlu0 %995 }
 0x2b2   : > { %1228 = vst.msk [vmem:[%s2905_s27 + $0x8] sm:$0xff] %vm1226_vm3, %v1015_v60  ;;  %v1132_v58 = vcvt.f32.s32 %v1131_v35  ;;  %v997_v57 = vcvt.f32.s32 %v996_v33 }
 0x2b3   : > { %v1593_v11 = vadd.f32 %v1592_v7, %v1578_v15 }
 0x2b4   : > { %v1135_v50 = vadd.s32 %v1134_v0, %v1132_v58  ;;  %v1000_v3 = vadd.s32 %v999_v40, %v997_v57 }
 0x2b5   : > { %v1594_v17 = vrot.slane %v1593_v11, 4  ;;  %v1041_v56 = vpop.xlane.xlu1 %1040  ;;  %v1116_v59 = vpop.xlane.xlu0 %1115 }
 0x2b6   : > { %1236 = vst.msk [vmem:[%s2905_s27 + $0x48] sm:$0xff] %vm1226_vm3, %v1135_v50  ;;  %1227 = vst.msk [vmem:[%s2905_s27] sm:$0xff] %vm1226_vm3, %v1000_v3  ;;  %v1042_v8 = vcvt.f32.s32 %v1041_v56  ;;  %v1117_v32 = vcvt.f32.s32 %v1116_v59 }
 0x2b7   : > { %v1595_v54 = vadd.f32 %v1594_v17, %v1593_v11 }
 0x2b8   : > { %v1045_v49 = vadd.s32 %v1044_v22, %v1042_v8  ;;  %v1120_v44 = vadd.s32 %v1119_v12, %v1117_v32 }
 0x2b9   : > { %v1161_v43 = vpop.xlane.xlu1 %1160  ;;  %v1026_v14 = vpop.xlane.xlu0 %1025  ;;  %v1596_v48 = vrot.slane %v1595_v54, 2 }
 0x2ba   : > { %1230 = vst.msk [vmem:[%s2905_s27 + $0x18] sm:$0xff] %vm1226_vm3, %v1045_v49  ;;  %1235 = vst.msk [vmem:[%s2905_s27 + $0x40] sm:$0xff] %vm1226_vm3, %v1120_v44  ;;  %v1162_v20 = vcvt.f32.s32 %v1161_v43  ;;  %v1027_v24 = vcvt.f32.s32 %v1026_v14 }
 0x2bb   : > { %v1597_v13 = vadd.f32 %v1596_v48, %v1595_v54 }
 0x2bc   : > { %v1165_v55 = vadd.s32 %v1164_v53, %v1162_v20  ;;  %v1030_v16 = vadd.s32 %v1029_v28, %v1027_v24 }
 0x2bd   : > { %v1146_v51 = vpop.xlane.xlu0 %1145  ;;  %v1598_v21 = vrot.slane %v1597_v13, 1 }
 0x2be   : > { %1238 = vst.msk [vmem:[%s2905_s27 + $0x58] sm:$0xff] %vm1226_vm3, %v1165_v55  ;;  %1229 = vst.msk [vmem:[%s2905_s27 + $0x10] sm:$0xff] %vm1226_vm3, %v1030_v16  ;;  %v1147_v38 = vcvt.f32.s32 %v1146_v51 }
 0x2bf   : > { %v1599_v63 = vadd.f32 %v1598_v21, %v1597_v13 }
 0x2c0   : > { %v1150_v30 = vadd.s32 %v1149_v26, %v1147_v38 }
 0x2c1   : > { %v1071_v45 = vpop.xlane.xlu1 %1070  ;;  %v1603_v41 = vsel %vm1602_vm5, %v1599_v63, 0.0 }
 0x2c2   : > { %1237 = vst.msk [vmem:[%s2905_s27 + $0x50] sm:$0xff] %vm1226_vm3, %v1150_v30  ;;  %v1072_v9 = vcvt.f32.s32 %v1071_v45  ;;  %1604 = vst [vmem:[%s201_s8] sm:$0xff] %v1603_v41 }
 0x2c3   : > { %2071 = shalt.err (!%p2068_p3)
}
 0x2c4   : > { %s2072_s17 = scalar_lea.hbm %s2941_s12, 128  ;;  %s2076_s24 = scalar_lea.hbm %s3015_s5, 384 }
 0x2c5   : > { %p2073_p4 = scmp.ne.s32.totalorder %s2941_s12, %s2072_s17  ;;  %p2077_p9 = scmp.lt.u32.totalorder %s2941_s12, %s3015_s5 }
 0x2c6   : > { %p2078_p10 = scmp.lt.u32.totalorder %s2076_s24, %s2072_s17  ;;  %p2080_p12 = scmp.lt.u32.totalorder %s2072_s17, %s2941_s12 }
 0x2c7   : > { %p2074_p7 = pnand %p2073_p4, %p2194_p5 }
 0x2c8   : > { %p2079_p11 = por %p2078_p10, %p2077_p9 }
 0x2c9   : > { %p2075_p8 = pneg %p2074_p7 }
 0x2ca   : > { %p2081_p13 = por %p2080_p12, %p2079_p11 }
 0x2cc   : > { %p2082_p0 = pnand %p2081_p13, %p2075_p8 }
 0x2ce   : > { %2085 = shalt.err (!%p2082_p0)
}
 0x2cf   : > { %1859 = dma.vmem_to_hbm [thread:$0]  (%p2194_p5), %s2943_s9, 128, %s2941_s12, %s1611_s0   ;;  %v1075_v31 = vadd.s32 %v1074_v10, %v1072_v9  ;;  %v1191_v25 = vpop.xlane.xlu1 %1190  ;;  %v1194_v34 = vshll.u32 %v1193_v19, 16  ;;  %v1103_v39 = vcvt.f32.s32 %v2806_v47  ;;  %v1223_v60 = vcvt.f32.s32 %v2811_v1 }
 0x2d0   : > { %v1192_v6 = vcvt.f32.s32 %v1191_v25  ;;  %v1058_v2 = vcvt.f32.s32 %v2822_v23  ;;  %v1178_v58 = vcvt.f32.s32 %v2829_v5  ;;  %v1088_v46 = vcvt.f32.s32 %v2834_v61 }
 0x2d1   : > { %1232 = vst.msk [vmem:[%s2905_s27 + $0x28] sm:$0xff] %vm1226_vm3, %v1075_v31  ;;  %v1104_v37 = vshll.u32 %v1103_v39, 16  ;;  %v1224_v7 = vshll.u32 %v1223_v60, 16  ;;  %v1208_v56 = vcvt.f32.s32 %v2839_v29 }
 0x2d2   : > { %v1195_v36 = vadd.s32 %v1194_v34, %v1192_v6  ;;  %v1059_v47 = vshll.u32 %v1058_v2, 16  ;;  %v1179_v50 = vshll.u32 %v1178_v58, 16  ;;  %v1089_v23 = vshll.u32 %v1088_v46, 16 }
 0x2d3   : > { %v1209_v27 = vshll.u32 %v1208_v56, 16 }
 0x2d4   : > { %1240 = vst.msk [vmem:[%s2905_s27 + $0x68] sm:$0xff] %vm1226_vm3, %v1195_v36 }
 0x2d9   : > { %v1101_v52 = vpop.xlane.xlu1 %1100 }
 0x2da   : > { %v1102_v0 = vcvt.f32.s32 %v1101_v52 }
 0x2dc   : > { %v1105_v40 = vadd.s32 %v1104_v37, %v1102_v0 }
 0x2dd   : > { %v1221_v18 = vpop.xlane.xlu1 %1220 }
 0x2de   : > { %1234 = vst.msk [vmem:[%s2905_s27 + $0x38] sm:$0xff] %vm1226_vm3, %v1105_v40  ;;  %v1222_v35 = vcvt.f32.s32 %v1221_v18 }
 0x2e0   : > { %v1225_v33 = vadd.s32 %v1224_v7, %v1222_v35 }
 0x2e2   : > { %1242 = vst.msk [vmem:[%s2905_s27 + $0x78] sm:$0xff] %vm1226_vm3, %v1225_v33 }
 0x2ed   : > { %v1056_v15 = vpop.xlane.xlu0 %1055 }
 0x2ee   : > { %v1057_v57 = vcvt.f32.s32 %v1056_v15 }
 0x2f0   : > { %v1060_v1 = vadd.s32 %v1059_v47, %v1057_v57 }
 0x2f1   : > { %v1176_v11 = vpop.xlane.xlu0 %1175 }
 0x2f2   : > { %1231 = vst.msk [vmem:[%s2905_s27 + $0x20] sm:$0xff] %vm1226_vm3, %v1060_v1  ;;  %v1177_v3 = vcvt.f32.s32 %v1176_v11 }
 0x2f4   : > { %v1180_v22 = vadd.s32 %v1179_v50, %v1177_v3 }
 0x2f6   : > { %1239 = vst.msk [vmem:[%s2905_s27 + $0x60] sm:$0xff] %vm1226_vm3, %v1180_v22 }
 0x2fd   : > { %v1086_v17 = vpop.xlane.xlu0 %1085 }
 0x2fe   : > { %v1087_v59 = vcvt.f32.s32 %v1086_v17 }
 0x300   : > { %v1090_v5 = vadd.s32 %v1089_v23, %v1087_v59 }
 0x301   : > { %v1206_v12 = vpop.xlane.xlu0 %1205 }
 0x302   : > { %1233 = vst.msk [vmem:[%s2905_s27 + $0x30] sm:$0xff] %vm1226_vm3, %v1090_v5  ;;  %v1207_v8 = vcvt.f32.s32 %v1206_v12 }
 0x304   : > { %v1210_v32 = vadd.s32 %v1209_v27, %v1207_v8 }
 0x306   : > { %1241 = vst.msk [vmem:[%s2905_s27 + $0x70] sm:$0xff] %vm1226_vm3, %v1210_v32 }
 0x307 PF: > { %p1865_p5 = scmp.ge.s32.totalorder %s2120_s23, 2  ;;  %s1648_s29 = sand.u32 1, %s2108_s20  }
 0x308   : > { %s1649_s7 = scalar_lea.sflag [#allocation5], %s1648_s29 }
 0x309   : > { %p1862_p1 = pnand %p1865_p5, %p2198_p6 }
 0x30b   : > { %2103 = dma.done.wait (!%p1862_p1), %s1649_s7, 128  }
 0x30c   : > { %2105 = vsyncadd (!%p1862_p1), %s1649_s7, 4294967168  ;;  %p17_p2 = scmp.ge.s32.totalorder %s2181_s25, 5   ;;  %s3074_s20 = smov %s2112_s21 }
 0x30d   : > { %s3075_s21 = smov %s2116_s22  ;;  %s3076_s22 = smov %s2192_s28 }
 0x30e   : > { %s3077_s23 = smov %s2181_s25  ;;  %19 = sbr.rel (!%p17_p2) target bundleno = 5 (0x5), region = 79 }
 0x315   :  { %1654 = vsyncpa [#allocation5], 1 }
 0x316   :  { %1656 = vsyncpa [#allocation5 + $0x1], 1 }

</bundles_post_ra>
